<compile_context>
chip_gen: v7x
topology: tpu7x:2x2x1
jax: 0.10.0
libtpu: 0.0.40
codegen_flags: <defaults>
</compile_context>

<pallas_src>
import jax
import jax.numpy as jnp
from jax.experimental import pallas as pl
from jax.experimental.pallas import tpu as pltpu


# ----------------------------- fused kernel ----------------------------------
def bow_fused_kernel(src_ids_ref, tgt_ids_ref, len_ref,
                     src_tab_ref, tgt_tab_ref, wq_s_ref, wo_c_ref, wo_q_ref,
                     out_ref):
    f32, bf16 = jnp.float32, jnp.bfloat16
    tb = out_ref.shape[0]                      # batch tile
    s = src_ids_ref.shape[0] // tb             # src_len
    v, h = src_tab_ref.shape                   # vocab, hidden

    # ------------------------------ encoder -----------------------------------
    # memory_bank = tanh(emb(src) @ W_enc) == tanh(gather(fused_src_table)).
    # Gather as a one-hot MXU matmul: (tb*s, v) @ (v, h).  memory_bank never
    # leaves VMEM/vregs.
    src_ids = src_ids_ref[...]                                        # (tb*s,1)
    onehot_src = (src_ids ==
                  jax.lax.broadcasted_iota(jnp.int32, (tb * s, v), 1)
                  ).astype(bf16)                                      # (tb*s,v)
    mem2d = jnp.tanh(jnp.dot(onehot_src, src_tab_ref[...],
                             preferred_element_type=f32))             # (tb*s,h)
    mem = mem2d.reshape(tb, s, h)        # split leading (sublane) dim only, f32

    # masked mean over valid source positions -> enc_state
    # (VPU multiply + sublane/XLU reduce; exact normalization).
    pos = jax.lax.broadcasted_iota(jnp.int32, (tb, s), 1)             # (tb, s)
    valid_mask = pos < len_ref[...]                                   # (tb, s)
    valid = valid_mask.astype(f32)
    den = jnp.maximum(jnp.sum(valid, axis=1, keepdims=True), 1.0)     # (tb, 1)
    mean_w = valid / den                                              # (tb, s)
    state = jnp.sum(mean_w[:, :, None] * mem, axis=1)                 # (tb, h)

    # ------------------------ decoder (single step on tgt[0]) -----------------
    # query = tanh(emb(tgt0) @ Wq_emb + enc_state @ Wq_state); the first term
    # is a one-hot gather of the fused tgt table (no concat, split weights).
    onehot_tgt = (tgt_ids_ref[...] ==
                  jax.lax.broadcasted_iota(jnp.int32, (tb, v), 1)
                  ).astype(bf16)                                      # (tb, v)
    q_emb = jnp.dot(onehot_tgt, tgt_tab_ref[...],
                    preferred_element_type=f32)                       # (tb, h)
    query = jnp.tanh(q_emb + jnp.dot(state.astype(bf16), wq_s_ref[...],
                                     preferred_element_type=f32))     # (tb, h)

    # masked dot-product attention: VPU multiply + lane (XLU) reduce over h.
    scores = jnp.sum(query[:, None, :] * mem, axis=-1)                # (tb, s)
    scores = jnp.where(valid_mask, scores, f32(-1e30))
    m = jnp.max(scores, axis=1, keepdims=True)
    p = jnp.exp(scores - m)
    probs = p / jnp.sum(p, axis=1, keepdims=True)                     # exact

    # context = attention-weighted sum of memory_bank (VPU + sublane reduce).
    context = jnp.sum(probs[:, :, None] * mem, axis=1)                # (tb, h)

    # dec_out = tanh(context @ Wout_ctx + query @ Wout_q)   (split W_out, MXU)
    out = jnp.tanh(
        jnp.dot(context.astype(bf16), wo_c_ref[...], preferred_element_type=f32)
        + jnp.dot(query.astype(bf16), wo_q_ref[...], preferred_element_type=f32))

    out_ref[...] = out.astype(out_ref.dtype)


# --------------------------------- wrapper ------------------------------------
def bow_gen_model_forward(params, src, tgt, lengths, *, batch_tile=32):
    """src: (src_len, batch, 1) int; tgt: (tgt_len, batch, 1) int;
    lengths: (batch,) int.  Returns dec_out (1, batch, hidden) float32."""
    S, B, _ = src.shape
    E = params["emb_src"].shape[1]
    H = params["w_enc"].shape[1]
    V = params["emb_src"].shape[0]

    # Batch tile: multiple of 8 (sublane tile); default 32 so the encoder
    # one-hot gather matmul has M = tb*S = 256 rows at S=8 (fills the
    # 256-row v6e/v7x MXU, >=128 rows for v5e).  Batch is padded to a tile
    # multiple; at real batch sizes the grid has many steps (pipelining +
    # both v7x TensorCores via the "parallel" axis).
    tb = max(8, (batch_tile // 8) * 8)
    B_pad = ((B + tb - 1) // tb) * tb
    grid = (B_pad // tb,)

    # ---- algebraic fold: row-gather commutes with a row-wise matmul, so -----
    #   emb_src @ W_enc   -> fused (V, H) src table
    #   emb_tgt @ Wq_emb  -> fused (V, H) tgt table
    # (one-time (V,E)@(E,H) cost in the wrapper; removes the dominant in-kernel
    #  matmul and all E-dim activation traffic).
    f32 = jnp.float32
    bf = lambda x: x.astype(jnp.bfloat16)
    src_tab = bf(params["emb_src"].astype(f32) @ params["w_enc"].astype(f32))
    tgt_tab = bf(params["emb_tgt"].astype(f32) @ params["w_q"][:E].astype(f32))
    wq_s = bf(params["w_q"][E:])                                  # (H, H)
    wo_c = bf(params["w_out"][:H])                                # (H, H)
    wo_q = bf(params["w_out"][H:])                                # (H, H)

    # ---- only tiny int32 ids / lengths are shipped to the kernel ------------
    src_ids = src[:, :, 0].T.astype(jnp.int32)                    # (B, S)
    tgt_ids = tgt[0, :, 0].astype(jnp.int32).reshape(B, 1)        # (B, 1)
    len_b1 = lengths.astype(jnp.int32).reshape(B, 1)              # (B, 1)
    if B_pad != B:
        pad = B_pad - B
        src_ids = jnp.pad(src_ids, ((0, pad), (0, 0)))
        tgt_ids = jnp.pad(tgt_ids, ((0, pad), (0, 0)))
        len_b1 = jnp.pad(len_b1, ((0, pad), (0, 0)), constant_values=1)
    src_ids_flat = src_ids.reshape(B_pad * S, 1)                  # (B_pad*S, 1)

    bcast = lambda shape: pl.BlockSpec(shape, lambda b: (0, 0))   # broadcast weights

    dec_out = pl.pallas_call(
        bow_fused_kernel,
        out_shape=jax.ShapeDtypeStruct((B_pad, H), jnp.float32),
        grid_spec=pltpu.PrefetchScalarGridSpec(
            num_scalar_prefetch=0,
            grid=grid,
            in_specs=[
                pl.BlockSpec((tb * S, 1), lambda b: (b, 0)),      # src ids
                pl.BlockSpec((tb, 1), lambda b: (b, 0)),          # tgt ids
                pl.BlockSpec((tb, 1), lambda b: (b, 0)),          # lengths
                bcast((V, H)),                                    # fused src table
                bcast((V, H)),                                    # fused tgt table
                bcast((H, H)),                                    # Wq_state
                bcast((H, H)),                                    # Wout_ctx
                bcast((H, H)),                                    # Wout_query
            ],
            out_specs=pl.BlockSpec((tb, H), lambda b: (b, 0)),
        ),
        compiler_params=pltpu.CompilerParams(
            dimension_semantics=("parallel",),     # megacore / v7x dual-TC
            vmem_limit_bytes=32 * 1024 * 1024,     # safe on v5e/v6e/v7x; per-step
                                                   # footprint is ~0.5 MiB at tb=32
        ),
    )(src_ids_flat, tgt_ids, len_b1, src_tab, tgt_tab, wq_s, wo_c, wo_q)

    # TODO(synk): the decoder's attention dict is dropped (caller discards it).
    # OpenNMT convention: (tgt_len, batch, hidden) with tgt_len == 1.
    return dec_out[:B][None, :, :]


# -------------------------- pure-f32 JAX reference ----------------------------
def bow_ref(params, src, tgt, lengths):
    S, B, _ = src.shape
    E = params["emb_src"].shape[1]
    H = params["w_enc"].shape[1]
    src_emb = params["emb_src"][src[:, :, 0]]                          # (S,B,E)
    mem = jnp.tanh(jnp.einsum("sbe,eh->sbh", src_emb, params["w_enc"]))
    mask = jnp.arange(S)[:, None] < lengths[None, :]                   # (S,B)
    valid = mask.astype(jnp.float32)
    den = jnp.maximum(valid.sum(0), 1.0)                               # (B,)
    state = jnp.einsum("sb,sbh->bh", valid, mem) / den[:, None]
    tgt_emb = params["emb_tgt"][tgt[0, :, 0]]                          # (B,E)
    query = jnp.tanh(tgt_emb @ params["w_q"][:E] + state @ params["w_q"][E:])
    scores = jnp.einsum("bh,sbh->bs", query, mem)
    scores = jnp.where(mask.T, scores, -1e30)
    probs = jax.nn.softmax(scores, axis=-1)
    context = jnp.einsum("bs,sbh->bh", probs, mem)
    out = jnp.tanh(context @ params["w_out"][:H] + query @ params["w_out"][H:])
    return out[None]


# ----------------------------------- main --------------------------------------
if __name__ == "__main__":
    B, S, T = 64, 8, 6          # batch, src_len, tgt_len (B=64, tb=32 -> grid=(2,))
    E, H, V = 128, 128, 64      # lane-dense emb / hidden dims, vocab

    key = jax.random.PRNGKey(0)
    k = jax.random.split(key, 8)

    params = {
        "emb_src": 0.1 * jax.random.normal(k[0], (V, E), jnp.float32),
        "emb_tgt": 0.1 * jax.random.normal(k[1], (V, E), jnp.float32),
        "w_enc":   0.1 * jax.random.normal(k[2], (E, H), jnp.float32),
        "w_q":     0.1 * jax.random.normal(k[3], (E + H, H), jnp.float32),
        "w_out":   0.1 * jax.random.normal(k[4], (2 * H, H), jnp.float32),
    }

    src = jax.random.randint(k[5], (S, B, 1), 0, V, dtype=jnp.int32)
    tgt = jax.random.randint(k[6], (T, B, 1), 0, V, dtype=jnp.int32)
    lengths = jax.random.randint(k[7], (B,), 1, S + 1, dtype=jnp.int32)

    dec_out = jax.jit(bow_gen_model_forward)(params, src, tgt, lengths)
    dec_out = jax.block_until_ready(dec_out)

    ref = bow_ref(params, src, tgt, lengths)

    assert dec_out.shape == (1, B, H)
    assert bool(jnp.all(jnp.isfinite(dec_out)))
    assert bool(jnp.allclose(dec_out, ref, atol=5e-2, rtol=5e-2))
    print("KERNEL_OK")
</pallas_src>

<mosaic_0001>
module attributes {stable_mosaic.version = 11 : i64} {
  func.func @bow_fused_kernel(%arg0: i32, %arg1: memref<256x1xi32, #tpu.memory_space<vmem>>, %arg2: memref<32x1xi32, #tpu.memory_space<vmem>>, %arg3: memref<32x1xi32, #tpu.memory_space<vmem>>, %arg4: memref<64x128xbf16, #tpu.memory_space<vmem>>, %arg5: memref<64x128xbf16, #tpu.memory_space<vmem>>, %arg6: memref<128x128xbf16, #tpu.memory_space<vmem>>, %arg7: memref<128x128xbf16, #tpu.memory_space<vmem>>, %arg8: memref<128x128xbf16, #tpu.memory_space<vmem>>, %arg9: memref<32x128xf32, #tpu.memory_space<vmem>>) attributes {dimension_semantics = [#tpu.dimension_semantics<parallel>], iteration_bounds = array<i64: 2>, scalar_prefetch = 0 : i64, scratch_operands = 0 : i64, tpu.core_type = #tpu.core_type<tc>, window_params = [{transform_indices = @transform_0, window_bounds = array<i64: 256, 1>}, {transform_indices = @transform_1, window_bounds = array<i64: 32, 1>}, {transform_indices = @transform_2, window_bounds = array<i64: 32, 1>}, {pipeline_mode = #tpu.pipeline_mode<synchronous>, transform_indices = @transform_3, window_bounds = array<i64: 64, 128>}, {pipeline_mode = #tpu.pipeline_mode<synchronous>, transform_indices = @transform_4, window_bounds = array<i64: 64, 128>}, {pipeline_mode = #tpu.pipeline_mode<synchronous>, transform_indices = @transform_5, window_bounds = array<i64: 128, 128>}, {pipeline_mode = #tpu.pipeline_mode<synchronous>, transform_indices = @transform_6, window_bounds = array<i64: 128, 128>}, {pipeline_mode = #tpu.pipeline_mode<synchronous>, transform_indices = @transform_7, window_bounds = array<i64: 128, 128>}, {transform_indices = @transform_8, window_bounds = array<i64: 32, 128>}]} {
    %c0 = arith.constant 0 : index
    %c0_0 = arith.constant 0 : index
    %0 = vector.load %arg1[%c0, %c0_0] : memref<256x1xi32, #tpu.memory_space<vmem>>, vector<256x1xi32>
    %1 = tpu.iota {dimensions = array<i32: 1>} : vector<256x64xi32>
    %2 = vector.broadcast %0 : vector<256x1xi32> to vector<256x64xi32>
    %3 = arith.cmpi eq, %2, %1 : vector<256x64xi32>
    %4 = arith.extui %3 : vector<256x64xi1> to vector<256x64xi32>
    %5 = arith.sitofp %4 : vector<256x64xi32> to vector<256x64xf32>
    %6 = arith.truncf %5 : vector<256x64xf32> to vector<256x64xbf16>
    %c0_1 = arith.constant 0 : index
    %c0_2 = arith.constant 0 : index
    %7 = vector.load %arg4[%c0_1, %c0_2] : memref<64x128xbf16, #tpu.memory_space<vmem>>, vector<64x128xbf16>
    %cst = arith.constant dense<0.000000e+00> : vector<256x128xf32>
    %8 = tpu.matmul %6, %7, %cst {dimension_numbers = #tpu.dot_dimension_numbers<[1], [0], [0], [1], [0, 0, 1, 1], [], []>} : vector<256x64xbf16>, vector<64x128xbf16>, vector<256x128xf32> -> vector<256x128xf32>
    %9 = math.tanh %8 : vector<256x128xf32>
    %10 = vector.shape_cast %9 : vector<256x128xf32> to vector<32x8x128xf32>
    %11 = tpu.iota {dimensions = array<i32: 1>} : vector<32x8xi32>
    %c0_3 = arith.constant 0 : index
    %c0_4 = arith.constant 0 : index
    %12 = vector.load %arg3[%c0_3, %c0_4] : memref<32x1xi32, #tpu.memory_space<vmem>>, vector<32x1xi32>
    %13 = vector.broadcast %12 : vector<32x1xi32> to vector<32x8xi32>
    %14 = arith.cmpi slt, %11, %13 : vector<32x8xi32>
    %15 = arith.extui %14 : vector<32x8xi1> to vector<32x8xi32>
    %16 = arith.sitofp %15 : vector<32x8xi32> to vector<32x8xf32>
    %cst_5 = arith.constant dense<0.000000e+00> : vector<32xf32>
    %17 = vector.multi_reduction <add>, %16, %cst_5 [1] : vector<32x8xf32> to vector<32xf32>
    %18 = vector.shape_cast %17 : vector<32xf32> to vector<32x1xf32>
    %cst_6 = arith.constant 1.000000e+00 : f32
    %19 = vector.broadcast %cst_6 : f32 to vector<32x1xf32>
    %20 = arith.maximumf %18, %19 : vector<32x1xf32>
    %21 = vector.broadcast %20 : vector<32x1xf32> to vector<32x8xf32>
    %22 = arith.divf %16, %21 : vector<32x8xf32>
    %23 = vector.shape_cast %22 : vector<32x8xf32> to vector<32x8x1xf32>
    %24 = vector.broadcast %23 : vector<32x8x1xf32> to vector<32x8x128xf32>
    %25 = arith.mulf %24, %10 : vector<32x8x128xf32>
    %cst_7 = arith.constant dense<0.000000e+00> : vector<32x128xf32>
    %26 = vector.multi_reduction <add>, %25, %cst_7 [1] : vector<32x8x128xf32> to vector<32x128xf32>
    %c0_8 = arith.constant 0 : index
    %c0_9 = arith.constant 0 : index
    %27 = vector.load %arg2[%c0_8, %c0_9] : memref<32x1xi32, #tpu.memory_space<vmem>>, vector<32x1xi32>
    %28 = tpu.iota {dimensions = array<i32: 1>} : vector<32x64xi32>
    %29 = vector.broadcast %27 : vector<32x1xi32> to vector<32x64xi32>
    %30 = arith.cmpi eq, %29, %28 : vector<32x64xi32>
    %31 = arith.extui %30 : vector<32x64xi1> to vector<32x64xi32>
    %32 = arith.sitofp %31 : vector<32x64xi32> to vector<32x64xf32>
    %33 = arith.truncf %32 : vector<32x64xf32> to vector<32x64xbf16>
    %c0_10 = arith.constant 0 : index
    %c0_11 = arith.constant 0 : index
    %34 = vector.load %arg5[%c0_10, %c0_11] : memref<64x128xbf16, #tpu.memory_space<vmem>>, vector<64x128xbf16>
    %cst_12 = arith.constant dense<0.000000e+00> : vector<32x128xf32>
    %35 = tpu.matmul %33, %34, %cst_12 {dimension_numbers = #tpu.dot_dimension_numbers<[1], [0], [0], [1], [0, 0, 1, 1], [], []>} : vector<32x64xbf16>, vector<64x128xbf16>, vector<32x128xf32> -> vector<32x128xf32>
    %36 = arith.truncf %26 : vector<32x128xf32> to vector<32x128xbf16>
    %c0_13 = arith.constant 0 : index
    %c0_14 = arith.constant 0 : index
    %37 = vector.load %arg6[%c0_13, %c0_14] : memref<128x128xbf16, #tpu.memory_space<vmem>>, vector<128x128xbf16>
    %cst_15 = arith.constant dense<0.000000e+00> : vector<32x128xf32>
    %38 = tpu.matmul %36, %37, %cst_15 {dimension_numbers = #tpu.dot_dimension_numbers<[1], [0], [0], [1], [0, 0, 1, 1], [], []>} : vector<32x128xbf16>, vector<128x128xbf16>, vector<32x128xf32> -> vector<32x128xf32>
    %39 = arith.addf %35, %38 : vector<32x128xf32>
    %40 = math.tanh %39 : vector<32x128xf32>
    %41 = vector.shape_cast %40 : vector<32x128xf32> to vector<32x1x128xf32>
    %42 = vector.broadcast %41 : vector<32x1x128xf32> to vector<32x8x128xf32>
    %43 = arith.mulf %42, %10 : vector<32x8x128xf32>
    %cst_16 = arith.constant dense<0.000000e+00> : vector<32x8xf32>
    %44 = vector.multi_reduction <add>, %43, %cst_16 [2] : vector<32x8x128xf32> to vector<32x8xf32>
    %cst_17 = arith.constant -1.000000e+30 : f32
    %45 = vector.broadcast %cst_17 : f32 to vector<32x8xf32>
    %46 = arith.select %14, %44, %45 : vector<32x8xi1>, vector<32x8xf32>
    %cst_18 = arith.constant dense<0xFF800000> : vector<32xf32>
    %47 = vector.multi_reduction <maximumf>, %46, %cst_18 [1] : vector<32x8xf32> to vector<32xf32>
    %48 = vector.shape_cast %47 : vector<32xf32> to vector<32x1xf32>
    %49 = vector.broadcast %48 : vector<32x1xf32> to vector<32x8xf32>
    %50 = arith.subf %46, %49 : vector<32x8xf32>
    %51 = math.exp %50 : vector<32x8xf32>
    %cst_19 = arith.constant dense<0.000000e+00> : vector<32xf32>
    %52 = vector.multi_reduction <add>, %51, %cst_19 [1] : vector<32x8xf32> to vector<32xf32>
    %53 = vector.shape_cast %52 : vector<32xf32> to vector<32x1xf32>
    %54 = vector.broadcast %53 : vector<32x1xf32> to vector<32x8xf32>
    %55 = arith.divf %51, %54 : vector<32x8xf32>
    %56 = vector.shape_cast %55 : vector<32x8xf32> to vector<32x8x1xf32>
    %57 = vector.broadcast %56 : vector<32x8x1xf32> to vector<32x8x128xf32>
    %58 = arith.mulf %57, %10 : vector<32x8x128xf32>
    %cst_20 = arith.constant dense<0.000000e+00> : vector<32x128xf32>
    %59 = vector.multi_reduction <add>, %58, %cst_20 [1] : vector<32x8x128xf32> to vector<32x128xf32>
    %60 = arith.truncf %59 : vector<32x128xf32> to vector<32x128xbf16>
    %c0_21 = arith.constant 0 : index
    %c0_22 = arith.constant 0 : index
    %61 = vector.load %arg7[%c0_21, %c0_22] : memref<128x128xbf16, #tpu.memory_space<vmem>>, vector<128x128xbf16>
    %cst_23 = arith.constant dense<0.000000e+00> : vector<32x128xf32>
    %62 = tpu.matmul %60, %61, %cst_23 {dimension_numbers = #tpu.dot_dimension_numbers<[1], [0], [0], [1], [0, 0, 1, 1], [], []>} : vector<32x128xbf16>, vector<128x128xbf16>, vector<32x128xf32> -> vector<32x128xf32>
    %63 = arith.truncf %40 : vector<32x128xf32> to vector<32x128xbf16>
    %c0_24 = arith.constant 0 : index
    %c0_25 = arith.constant 0 : index
    %64 = vector.load %arg8[%c0_24, %c0_25] : memref<128x128xbf16, #tpu.memory_space<vmem>>, vector<128x128xbf16>
    %cst_26 = arith.constant dense<0.000000e+00> : vector<32x128xf32>
    %65 = tpu.matmul %63, %64, %cst_26 {dimension_numbers = #tpu.dot_dimension_numbers<[1], [0], [0], [1], [0, 0, 1, 1], [], []>} : vector<32x128xbf16>, vector<128x128xbf16>, vector<32x128xf32> -> vector<32x128xf32>
    %66 = arith.addf %62, %65 : vector<32x128xf32>
    %67 = math.tanh %66 : vector<32x128xf32>
    %c0_27 = arith.constant 0 : index
    %c0_28 = arith.constant 0 : index
    %68 = vector.load %arg9[%c0_27, %c0_28] : memref<32x128xf32, #tpu.memory_space<vmem>>, vector<32x128xf32>
    tpu.vector_store %arg9[%c0_27, %c0_28], %67 {strides = array<i32>} : memref<32x128xf32, #tpu.memory_space<vmem>>, vector<32x128xf32>,
    return
  }
  func.func @transform_0(%arg0: i32) -> (i32, i32) {
    %c0_i32 = arith.constant 0 : i32
    %c0_i32_0 = arith.constant 0 : i32
    return %arg0, %c0_i32 : i32, i32
  }
  func.func @transform_1(%arg0: i32) -> (i32, i32) {
    %c0_i32 = arith.constant 0 : i32
    %c0_i32_0 = arith.constant 0 : i32
    return %arg0, %c0_i32 : i32, i32
  }
  func.func @transform_2(%arg0: i32) -> (i32, i32) {
    %c0_i32 = arith.constant 0 : i32
    %c0_i32_0 = arith.constant 0 : i32
    return %arg0, %c0_i32 : i32, i32
  }
  func.func @transform_3(%arg0: i32) -> (i32, i32) {
    %c0_i32 = arith.constant 0 : i32
    %c0_i32_0 = arith.constant 0 : i32
    %c0_i32_1 = arith.constant 0 : i32
    return %c0_i32, %c0_i32_0 : i32, i32
  }
  func.func @transform_4(%arg0: i32) -> (i32, i32) {
    %c0_i32 = arith.constant 0 : i32
    %c0_i32_0 = arith.constant 0 : i32
    %c0_i32_1 = arith.constant 0 : i32
    return %c0_i32, %c0_i32_0 : i32, i32
  }
  func.func @transform_5(%arg0: i32) -> (i32, i32) {
    %c0_i32 = arith.constant 0 : i32
    %c0_i32_0 = arith.constant 0 : i32
    %c0_i32_1 = arith.constant 0 : i32
    return %c0_i32, %c0_i32_0 : i32, i32
  }
  func.func @transform_6(%arg0: i32) -> (i32, i32) {
    %c0_i32 = arith.constant 0 : i32
    %c0_i32_0 = arith.constant 0 : i32
    %c0_i32_1 = arith.constant 0 : i32
    return %c0_i32, %c0_i32_0 : i32, i32
  }
  func.func @transform_7(%arg0: i32) -> (i32, i32) {
    %c0_i32 = arith.constant 0 : i32
    %c0_i32_0 = arith.constant 0 : i32
    %c0_i32_1 = arith.constant 0 : i32
    return %c0_i32, %c0_i32_0 : i32, i32
  }
  func.func @transform_8(%arg0: i32) -> (i32, i32) {
    %c0_i32 = arith.constant 0 : i32
    %c0_i32_0 = arith.constant 0 : i32
    return %arg0, %c0_i32 : i32, i32
  }
}

</mosaic_0001>

<bundles_post_ra>
// kernel: bow_gen_model_forward.1
= control target key start
LH: loop header
LB: loop body
LE: loop exit
PB: predicated region body
PF: predicated region fallthrough
CT: control target
= control target key end

     0   :  { %13 = vsyncpa [#allocation3], 0  ;;  %s5078_s0 = inlined_call_operand.vmem [shape: s32[512,1], index: 0, kind: input, shape index: {}]   ;;  %s5079_s1 = inlined_call_operand.vmem [shape: s32[64,1], index: 1, kind: input, shape index: {}]   ;;  %s5080_s2 = inlined_call_operand.vmem [shape: s32[64,1], index: 2, kind: input, shape index: {}]   ;;  %s5081_s3 = inlined_call_operand.vmem [shape: bf16[64,128], index: 3, kind: input, shape index: {}]   ;;  %s5082_s4 = inlined_call_operand.vmem [shape: bf16[64,128], index: 4, kind: input, shape index: {}]   ;;  %s5083_s5 = inlined_call_operand.vmem [shape: bf16[128,128], index: 5, kind: input, shape index: {}]   ;;  %s5084_s6 = inlined_call_operand.vmem [shape: bf16[128,128], index: 6, kind: input, shape index: {}]   ;;  %s5085_s7 = inlined_call_operand.vmem [shape: bf16[128,128], index: 7, kind: input, shape index: {}]   ;;  %s5086_s8 = inlined_call_operand.hbm [shape: f32[64,128], index: 8, kind: output, shape index: {}]  }
   0x1   :  { %15 = vsyncpa [#allocation3 + $0x1], 0  ;;  %s3934_s27 = smov 0   ;;  %s3936_s28 = smov 0  }
   0x2   :  { %s3938_s29 = smov 0   ;;  %s3940_s30 = smov 0  }
   0x3 LB: > { %s3955_s9 = sadd.s32 4294967295, %s3881_s30   ;;  %s3346_s10 = sadd.s32 4294967294, %s3881_s30   ;;  %s3881_s30 = sphi %s3940_s30, %s5223_s30   ;;  %s3877_s29 = sphi %s3938_s29, %s5222_s29   ;;  %s3873_s28 = sphi %s3936_s28, %s5221_s28   ;;  %s3869_s27 = sphi %s3934_s27, %s5220_s27  }
   0x4   : > { %s3959_s11 = sadd.s32 1, %s3881_s30   ;;  %s211_s12 = sadd.s32 1, %s3877_s29 }
   0x5   : > { %s208_s13 = ssub.s32 %s3881_s30, %s3959_s11  ;;  %p221_p0 = scmp.ne.s32.totalorder %s3877_s29, %s3873_s28 }
   0x6   : > { %p209_p1 = scmp.eq.s32.totalorder %s208_s13, 0  ;;  %p222_p2 = scmp.eq.s32.totalorder %s3955_s9, 1 }
   0x7   : > { %p227_p3 = scmp.ne.s32.totalorder %s3873_s28, %s3869_s27  ;;  %p228_p4 = scmp.eq.s32.totalorder %s3346_s10, 1 }
   0x8   : > { %s3970_s14 = scalar_select %p209_p1, %s3877_s29, %s211_s12  }
   0x9   : > { %p3972_p5 = por %p222_p2, %p221_p0  ;;  %p3976_p6 = por %p228_p4, %p227_p3 }
   0xa   : > { %p3349_p7 = scmp.ge.s32.totalorder %s3881_s30, 1  ;;  %p288_p8 = scmp.lt.s32.totalorder %s3881_s30, 3 }
   0xc   : > { %p289_p9 = pnand %p3349_p7, %p288_p8 }
   0xe   : > { %292 = sbr.rel (%p289_p9) target bundleno = 1799 (0x707), region = 52 }
  0x15   : > { %s3351_s17 = sshll.u32 %s3955_s9, 5  ;;  %v3683_v0 = vld [vmem:[%s5081_s3] sm:$0xff]   ;;  %v3883_v1 = vmov 0   ;;  %v3684_v2 = vld [vmem:[%s5081_s3 + $0x8] sm:$0xff]   ;;  %v3685_v13 = vld [vmem:[%s5081_s3 + $0x10] sm:$0xff]   ;;  %v384_v41 = vlaneseq  ;;  %v5087_v45 = vmov 0.0  }
  0x16   : > { %3682 = vset.pattern.permute.xlu1 %v3883_v1  ;;  %3681 = vset.pattern.permute.xlu0 %v3883_v1  ;;  %p333_p10 = scmp.lt.s32.totalorder %s3351_s17, 63  ;;  %v3686_v14 = vld [vmem:[%s5081_s3 + $0x18] sm:$0xff]   ;;  %vm626_vm4 = vcmask 523264  }
  0x17   : > { %3509 = vmatprep.subr.bf16.mxu0 %v3683_v0  ;;  %3621 = vmatprep.subr.bf16.mxu1 %v3683_v0  ;;  %v4042_v42 = vand.u32 127, %v384_v41 }
  0x18   : > { %s5225_s17 = smov (!%p333_p10, %s3351_s17), 63  ;;  %3510 = vmatpush3.bf16.msra.mxu0 %v3683_v0  ;;  %3625 = vmatpush3.bf16.msra.mxu1 %v3683_v0 }
  0x19   : > { %3511 = vmatprep.subr.bf16.mxu0 %v3684_v2  ;;  %3622 = vmatprep.subr.bf16.mxu1 %v3684_v2  ;;  %s3352_s22 = sshll.u32 %s5225_s17, 3  ;;  %s3353_s17 = sshll.u32 %s3955_s9, 2 }
  0x1a   : > { %s3992_s25 = scalar_lea.vmem %s5078_s0, %s3352_s22  ;;  %p339_p11 = scmp.lt.s32.totalorder %s3353_s17, 7 }
  0x1b   : > { %v354_v3 = vld [vmem:[%s3992_s25 + $0x10] sm:$0xff]  ;;  %v352_v4 = vld [vmem:[%s3992_s25] sm:$0xff]  ;;  %v355_v5 = vld [vmem:[%s3992_s25 + $0x18] sm:$0xff] }
  0x1c   : > { %3512 = vmatpush3.bf16.msra.mxu0 %v3684_v2  ;;  %3626 = vmatpush3.bf16.msra.mxu1 %v3684_v2  ;;  %v353_v6 = vld [vmem:[%s3992_s25 + $0x8] sm:$0xff]  ;;  %v368_v8 = vld [vmem:[%s3992_s25 + $0x80] sm:$0xff]  ;;  %v371_v9 = vld [vmem:[%s3992_s25 + $0x98] sm:$0xff]  ;;  %s5227_s17 = smov (!%p339_p11, %s3353_s17), 7 }
  0x1d   : > { %393 = vperm.xlu1 %3682, %v354_v3   ;;  %387 = vperm.xlu0 %3681, %v352_v4   ;;  %v369_v7 = vld [vmem:[%s3992_s25 + $0x88] sm:$0xff]  ;;  %v370_v10 = vld [vmem:[%s3992_s25 + $0x90] sm:$0xff]  ;;  %v356_v12 = vld [vmem:[%s3992_s25 + $0x20] sm:$0xff]  ;;  %s3354_s18 = sshll.u32 %s5227_s17, 3  ;;  %s3452_s17 = sshll.u32 %s3955_s9, 9 }
  0x1e   : > { %v357_v11 = vld [vmem:[%s3992_s25 + $0x28] sm:$0xff]  ;;  %3513 = vmatprep.subr.bf16.mxu0 %v3685_v13  ;;  %3623 = vmatprep.subr.bf16.mxu1 %v3685_v13  ;;  %v359_v15 = vld [vmem:[%s3992_s25 + $0x38] sm:$0xff]  ;;  %v358_v16 = vld [vmem:[%s3992_s25 + $0x30] sm:$0xff]  ;;  %s348_s21 = scalar_lea.vmem %s5080_s2, %s3354_s18  ;;  %s342_s12 = scalar_lea.vmem %s5079_s1, %s3354_s18 }
  0x1f   : > { %v373_v17 = vld [vmem:[%s3992_s25 + $0xa8] sm:$0xff]  ;;  %v372_v18 = vld [vmem:[%s3992_s25 + $0xa0] sm:$0xff]  ;;  %v375_v19 = vld [vmem:[%s3992_s25 + $0xb8] sm:$0xff]  ;;  %s5033_s23 = scalar_lea.hbm %s5086_s8, %s3452_s17 }
  0x20   : > { %3514 = vmatpush3.bf16.msra.mxu0 %v3685_v13  ;;  %3627 = vmatpush3.bf16.msra.mxu1 %v3685_v13  ;;  %v374_v20 = vld [vmem:[%s3992_s25 + $0xb0] sm:$0xff]  ;;  %v361_v21 = vld [vmem:[%s3992_s25 + $0x48] sm:$0xff]  ;;  %v360_v22 = vld [vmem:[%s3992_s25 + $0x40] sm:$0xff] }
  0x21   : > { %396 = vperm.xlu1 %3682, %v355_v5   ;;  %390 = vperm.xlu0 %3681, %v353_v6   ;;  %v363_v23 = vld [vmem:[%s3992_s25 + $0x58] sm:$0xff]  ;;  %v362_v24 = vld [vmem:[%s3992_s25 + $0x50] sm:$0xff]  ;;  %v377_v25 = vld [vmem:[%s3992_s25 + $0xc8] sm:$0xff] }
  0x22   : > { %3515 = vmatprep.subr.bf16.mxu0 %v3686_v14  ;;  %3624 = vmatprep.subr.bf16.mxu1 %v3686_v14  ;;  %v376_v26 = vld [vmem:[%s3992_s25 + $0xc0] sm:$0xff]  ;;  %v379_v27 = vld [vmem:[%s3992_s25 + $0xd8] sm:$0xff]  ;;  %v378_v28 = vld [vmem:[%s3992_s25 + $0xd0] sm:$0xff] }
  0x23   : > { %v365_v29 = vld [vmem:[%s3992_s25 + $0x68] sm:$0xff]  ;;  %v364_v30 = vld [vmem:[%s3992_s25 + $0x60] sm:$0xff]  ;;  %v367_v31 = vld [vmem:[%s3992_s25 + $0x78] sm:$0xff] }
  0x24   : > { %3516 = vmatpush3.bf16.msra.mxu0 %v3686_v14  ;;  %3628 = vmatpush3.bf16.msra.mxu1 %v3686_v14  ;;  %v366_v32 = vld [vmem:[%s3992_s25 + $0x70] sm:$0xff]  ;;  %v381_v33 = vld [vmem:[%s3992_s25 + $0xe8] sm:$0xff]  ;;  %v380_v34 = vld [vmem:[%s3992_s25 + $0xe0] sm:$0xff] }
  0x25   : > { %438 = vperm.xlu1 %3682, %v369_v7   ;;  %435 = vperm.xlu0 %3681, %v368_v8   ;;  %v383_v35 = vld [vmem:[%s3992_s25 + $0xf8] sm:$0xff]  ;;  %v382_v36 = vld [vmem:[%s3992_s25 + $0xf0] sm:$0xff]  ;;  %v869_v37 = vld [vmem:[%s348_s21 + $0x8] sm:$0xff]  ;;  %s3886_s25 = smov [#allocation2]  }
  0x26   : > { %v868_v38 = vld [vmem:[%s348_s21] sm:$0xff]  ;;  %v871_v39 = vld [vmem:[%s348_s21 + $0x18] sm:$0xff]  ;;  %v870_v40 = vld [vmem:[%s348_s21 + $0x10] sm:$0xff]  ;;  %s3823_s26 = sshll.u32 %s3886_s25, 4  ;;  %s3824_s26 = int_to_ptr.vmem [resolvable:$false] %s3823_s26 }
  0x27   : > { %s3825_s10 = scalar_lea.vmem %s3824_s26, 1024 }
  0x29   : > { %444 = vperm.xlu1 %3682, %v371_v9   ;;  %441 = vperm.xlu0 %3681, %v370_v10  }
  0x2d   : > { %402 = vperm.xlu1 %3682, %v357_v11   ;;  %399 = vperm.xlu0 %3681, %v356_v12  }
  0x31   : > { %408 = vperm.xlu1 %3682, %v359_v15   ;;  %405 = vperm.xlu0 %3681, %v358_v16  }
  0x35   : > { %450 = vperm.xlu1 %3682, %v373_v17   ;;  %447 = vperm.xlu0 %3681, %v372_v18  }
  0x39   : > { %456 = vperm.xlu1 %3682, %v375_v19   ;;  %453 = vperm.xlu0 %3681, %v374_v20  }
  0x3d   : > { %414 = vperm.xlu1 %3682, %v361_v21   ;;  %411 = vperm.xlu0 %3681, %v360_v22  }
  0x41   : > { %420 = vperm.xlu1 %3682, %v363_v23   ;;  %417 = vperm.xlu0 %3681, %v362_v24  }
  0x45   : > { %462 = vperm.xlu1 %3682, %v377_v25   ;;  %459 = vperm.xlu0 %3681, %v376_v26  }
  0x49   : > { %468 = vperm.xlu1 %3682, %v379_v27   ;;  %465 = vperm.xlu0 %3681, %v378_v28  }
  0x4d   : > { %426 = vperm.xlu1 %3682, %v365_v29   ;;  %423 = vperm.xlu0 %3681, %v364_v30  }
  0x51   : > { %432 = vperm.xlu1 %3682, %v367_v31   ;;  %429 = vperm.xlu0 %3681, %v366_v32  }
  0x55   : > { %474 = vperm.xlu1 %3682, %v381_v33   ;;  %471 = vperm.xlu0 %3681, %v380_v34  }
  0x59   : > { %480 = vperm.xlu1 %3682, %v383_v35   ;;  %477 = vperm.xlu0 %3681, %v382_v36  }
  0x5d   : > { %876 = vperm.xlu1 %3682, %v869_v37   ;;  %873 = vperm.xlu0 %3681, %v868_v38  }
  0x61   : > { %882 = vperm.xlu1 %3682, %v871_v39   ;;  %879 = vperm.xlu0 %3681, %v870_v40  }
  0x9c   : > { %v394_v43 = vpop.permute.xlu1 %393  ;;  %v388_v44 = vpop.permute.xlu0 %387 }
  0x9d   : > { %vm484_vm0 = vcmp.eq.s32.totalorder %v394_v43, %v4042_v42  ;;  %vm482_vm1 = vcmp.eq.s32.totalorder %v388_v44, %v4042_v42 }
  0x9e   : > { %v3359_v46 = vsel %vm484_vm0, 1.0, %v5087_v45  ;;  %v3357_v50 = vsel %vm482_vm1, 1.0, %v5087_v45 }
  0xa0   : > { %v397_v47 = vpop.permute.xlu1 %396  ;;  %v391_v48 = vpop.permute.xlu0 %390 }
  0xa1   : > { %vm485_vm2 = vcmp.eq.s32.totalorder %v397_v47, %v4042_v42  ;;  %vm483_vm3 = vcmp.eq.s32.totalorder %v391_v48, %v4042_v42 }
  0xa2   : > { %v3360_v49 = vsel %vm485_vm2, 1.0, %v5087_v45  ;;  %v3358_v51 = vsel %vm483_vm3, 1.0, %v5087_v45 }
  0xa3   : > { %v579_v52 = vpack.c.bf16 %v3360_v49, %v3359_v46  ;;  %v578_v53 = vpack.c.bf16 %v3358_v51, %v3357_v50 }
  0xa4   : > { %v439_v54 = vpop.permute.xlu1 %438  ;;  %v436_v55 = vpop.permute.xlu0 %435 }
  0xa5   : > { %vm499_vm5 = vcmp.eq.s32.totalorder %v439_v54, %v4042_v42  ;;  %vm498_vm6 = vcmp.eq.s32.totalorder %v436_v55, %v4042_v42  ;;  %3517 = vmatprep.mubr.msk.bf16.mxu0 %vm626_vm4, %v578_v53 }
  0xa6   : > { %3518 = vmatmul.mubr.msk.bf16.vlgmr.msra.gmra.mrb[0].mxu0 %vm626_vm4, %v579_v52  ;;  %v3373_v56 = vsel %vm498_vm6, 1.0, %v5087_v45  ;;  %v3374_v57 = vsel %vm499_vm5, 1.0, %v5087_v45 }
  0xa7   : > { %v586_v58 = vpack.c.bf16 %v3374_v57, %v3373_v56 }
  0xa8   : > { %v445_v59 = vpop.permute.xlu1 %444  ;;  %v442_v60 = vpop.permute.xlu0 %441 }
  0xa9   : > { %vm501_vm7 = vcmp.eq.s32.totalorder %v445_v59, %v4042_v42  ;;  %vm500_vm8 = vcmp.eq.s32.totalorder %v442_v60, %v4042_v42  ;;  %3533 = vmatprep.mubr.msk.bf16.mxu1 %vm626_vm4, %v586_v58 }
  0xaa   : > { %v3376_v61 = vsel %vm501_vm7, 1.0, %v5087_v45  ;;  %v3375_v62 = vsel %vm500_vm8, 1.0, %v5087_v45 }
  0xab   : > { %v587_v63 = vpack.c.bf16 %v3376_v61, %v3375_v62 }
  0xac   : > { %v403_v0 = vpop.permute.xlu1 %402  ;;  %v400_v1 = vpop.permute.xlu0 %399 }
  0xad   : > { %vm487_vm9 = vcmp.eq.s32.totalorder %v403_v0, %v4042_v42  ;;  %vm486_vm10 = vcmp.eq.s32.totalorder %v400_v1, %v4042_v42  ;;  %3534 = vmatmul.mubr.msk.bf16.vlgmr.msra.gmra.mrb[0].mxu1 %vm626_vm4, %v587_v63 }
  0xae   : > { %v3362_v2 = vsel %vm487_vm9, 1.0, %v5087_v45  ;;  %v3361_v3 = vsel %vm486_vm10, 1.0, %v5087_v45 }
  0xaf   : > { %v580_v4 = vpack.c.bf16 %v3362_v2, %v3361_v3 }
  0xb0   : > { %v409_v5 = vpop.permute.xlu1 %408  ;;  %v406_v6 = vpop.permute.xlu0 %405 }
  0xb1   : > { %vm489_vm11 = vcmp.eq.s32.totalorder %v409_v5, %v4042_v42  ;;  %vm488_vm12 = vcmp.eq.s32.totalorder %v406_v6, %v4042_v42  ;;  %3521 = vmatprep.mubr.msk.bf16.mxu0 %vm626_vm4, %v580_v4 }
  0xb2   : > { %v3364_v7 = vsel %vm489_vm11, 1.0, %v5087_v45  ;;  %v3363_v8 = vsel %vm488_vm12, 1.0, %v5087_v45 }
  0xb3   : > { %v581_v9 = vpack.c.bf16 %v3364_v7, %v3363_v8 }
  0xb4   : > { %v451_v10 = vpop.permute.xlu1 %450  ;;  %v448_v11 = vpop.permute.xlu0 %447 }
  0xb5   : > { %vm503_vm13 = vcmp.eq.s32.totalorder %v451_v10, %v4042_v42  ;;  %vm502_vm14 = vcmp.eq.s32.totalorder %v448_v11, %v4042_v42  ;;  %3522 = vmatmul.mubr.msk.bf16.gmra.mrb[4].mxu0 %vm626_vm4, %v581_v9 }
  0xb6   : > { %v3378_v12 = vsel %vm503_vm13, 1.0, %v5087_v45  ;;  %v3377_v13 = vsel %vm502_vm14, 1.0, %v5087_v45 }
  0xb7   : > { %v588_v14 = vpack.c.bf16 %v3378_v12, %v3377_v13 }
  0xb8   : > { %v457_v15 = vpop.permute.xlu1 %456  ;;  %v454_v16 = vpop.permute.xlu0 %453 }
  0xb9   : > { %vm505_vm15 = vcmp.eq.s32.totalorder %v457_v15, %v4042_v42  ;;  %vm504_vm0 = vcmp.eq.s32.totalorder %v454_v16, %v4042_v42  ;;  %3537 = vmatprep.mubr.msk.bf16.mxu1 %vm626_vm4, %v588_v14 }
  0xba   : > { %v3380_v17 = vsel %vm505_vm15, 1.0, %v5087_v45  ;;  %v3379_v18 = vsel %vm504_vm0, 1.0, %v5087_v45 }
  0xbb   : > { %v589_v19 = vpack.c.bf16 %v3380_v17, %v3379_v18 }
  0xbc   : > { %v415_v20 = vpop.permute.xlu1 %414  ;;  %v412_v21 = vpop.permute.xlu0 %411 }
  0xbd   : > { %vm491_vm1 = vcmp.eq.s32.totalorder %v415_v20, %v4042_v42  ;;  %vm490_vm2 = vcmp.eq.s32.totalorder %v412_v21, %v4042_v42  ;;  %3538 = vmatmul.mubr.msk.bf16.gmra.mrb[4].mxu1 %vm626_vm4, %v589_v19  ;;  %v4161_v19 = vshrl.u32 %v384_v41, 7 }
  0xbe   : > { %v3366_v22 = vsel %vm491_vm1, 1.0, %v5087_v45  ;;  %v3365_v23 = vsel %vm490_vm2, 1.0, %v5087_v45  ;;  %vm896_vm2 = vcmask 64512  }
  0xbf   : > { %v582_v24 = vpack.c.bf16 %v3366_v22, %v3365_v23  ;;  %v4168_v23 = vsub.s32 0, %v4161_v19 }
  0xc0   : > { %v421_v25 = vpop.permute.xlu1 %420  ;;  %v418_v26 = vpop.permute.xlu0 %417 }
  0xc1   : > { %vm493_vm3 = vcmp.eq.s32.totalorder %v421_v25, %v4042_v42  ;;  %vm492_vm5 = vcmp.eq.s32.totalorder %v418_v26, %v4042_v42  ;;  %3525 = vmatprep.mubr.msk.bf16.mxu0 %vm626_vm4, %v582_v24  ;;  %v4171_v24 = vsub.s32 1, %v4161_v19 }
  0xc2   : > { %v3368_v27 = vsel %vm493_vm3, 1.0, %v5087_v45  ;;  %v3367_v28 = vsel %vm492_vm5, 1.0, %v5087_v45 }
  0xc3   : > { %v583_v29 = vpack.c.bf16 %v3368_v27, %v3367_v28  ;;  %5154 = vst [vmem:[#allocation9_spill] sm:$0xff] %v4171_v24 }
  0xc4   : > { %v463_v30 = vpop.permute.xlu1 %462  ;;  %v460_v31 = vpop.permute.xlu0 %459 }
  0xc5   : > { %vm507_vm6 = vcmp.eq.s32.totalorder %v463_v30, %v4042_v42  ;;  %vm506_vm7 = vcmp.eq.s32.totalorder %v460_v31, %v4042_v42  ;;  %3526 = vmatmul.mubr.msk.bf16.gmra.mrb[8].mxu0 %vm626_vm4, %v583_v29  ;;  %v4186_v31 = vsub.s32 2, %v4161_v19 }
  0xc6   : > { %v3382_v32 = vsel %vm507_vm6, 1.0, %v5087_v45  ;;  %v3381_v33 = vsel %vm506_vm7, 1.0, %v5087_v45 }
  0xc7   : > { %v590_v34 = vpack.c.bf16 %v3382_v32, %v3381_v33  ;;  %5155 = vst [vmem:[#allocation10_spill] sm:$0xff] %v4186_v31 }
  0xc8   : > { %v469_v35 = vpop.permute.xlu1 %468  ;;  %v466_v36 = vpop.permute.xlu0 %465 }
  0xc9   : > { %vm509_vm8 = vcmp.eq.s32.totalorder %v469_v35, %v4042_v42  ;;  %vm508_vm9 = vcmp.eq.s32.totalorder %v466_v36, %v4042_v42  ;;  %3541 = vmatprep.mubr.msk.bf16.mxu1 %vm626_vm4, %v590_v34 }
  0xca   : > { %v3384_v37 = vsel %vm509_vm8, 1.0, %v5087_v45  ;;  %v3383_v38 = vsel %vm508_vm9, 1.0, %v5087_v45  ;;  %vm1519_vm8 = vcmask 1041409   ;;  %vm1521_vm9 = vcmask 1042434  }
  0xcb   : > { %v591_v39 = vpack.c.bf16 %v3384_v37, %v3383_v38 }
  0xcc   : > { %v427_v40 = vpop.permute.xlu1 %426  ;;  %v424_v43 = vpop.permute.xlu0 %423 }
  0xcd   : > { %vm495_vm10 = vcmp.eq.s32.totalorder %v427_v40, %v4042_v42  ;;  %vm494_vm11 = vcmp.eq.s32.totalorder %v424_v43, %v4042_v42  ;;  %3542 = vmatmul.mubr.msk.bf16.gmra.mrb[8].mxu1 %vm626_vm4, %v591_v39 }
  0xce   : > { %v3370_v44 = vsel %vm495_vm10, 1.0, %v5087_v45  ;;  %v3369_v46 = vsel %vm494_vm11, 1.0, %v5087_v45  ;;  %vm1523_vm10 = vcmask 1043459   ;;  %vm1525_vm11 = vcmask 1044484  }
  0xcf   : > { %v584_v47 = vpack.c.bf16 %v3370_v44, %v3369_v46 }
  0xd0   : > { %v433_v48 = vpop.permute.xlu1 %432  ;;  %v430_v49 = vpop.permute.xlu0 %429 }
  0xd1   : > { %vm497_vm12 = vcmp.eq.s32.totalorder %v433_v48, %v4042_v42  ;;  %vm496_vm13 = vcmp.eq.s32.totalorder %v430_v49, %v4042_v42  ;;  %3529 = vmatprep.mubr.msk.bf16.mxu0 %vm626_vm4, %v584_v47 }
  0xd2   : > { %v3372_v50 = vsel %vm497_vm12, 1.0, %v5087_v45  ;;  %v3371_v51 = vsel %vm496_vm13, 1.0, %v5087_v45  ;;  %vm1527_vm12 = vcmask 1045509   ;;  %vm1529_vm13 = vcmask 1046534  }
  0xd3   : > { %v585_v52 = vpack.c.bf16 %v3372_v50, %v3371_v51 }
  0xd4   : > { %v475_v53 = vpop.permute.xlu1 %474  ;;  %v472_v54 = vpop.permute.xlu0 %471 }
  0xd5   : > { %vm511_vm14 = vcmp.eq.s32.totalorder %v475_v53, %v4042_v42  ;;  %vm510_vm15 = vcmp.eq.s32.totalorder %v472_v54, %v4042_v42  ;;  %3530 = vmatmul.mubr.msk.bf16.gmra.mrb[12].mxu0 %vm626_vm4, %v585_v52  ;;  %v4219_v52 = vsub.s32 3, %v4161_v19 }
  0xd6   : > { %v3386_v55 = vsel %vm511_vm14, 1.0, %v5087_v45  ;;  %v3385_v56 = vsel %vm510_vm15, 1.0, %v5087_v45  ;;  %vm1531_vm14 = vcmask 1047559  }
  0xd7   : > { %v592_v57 = vpack.c.bf16 %v3386_v55, %v3385_v56  ;;  %5156 = vst [vmem:[#allocation11_spill] sm:$0xff] %v4219_v52 }
  0xd8   : > { %v481_v58 = vpop.permute.xlu1 %480  ;;  %v478_v59 = vpop.permute.xlu0 %477 }
  0xd9   : > { %vm513_vm0 = vcmp.eq.s32.totalorder %v481_v58, %v4042_v42  ;;  %vm512_vm1 = vcmp.eq.s32.totalorder %v478_v59, %v4042_v42  ;;  %3545 = vmatprep.mubr.msk.bf16.mxu1 %vm626_vm4, %v592_v57 }
  0xda   : > { %v3388_v60 = vsel %vm513_vm0, 1.0, %v5087_v45  ;;  %v3387_v61 = vsel %vm512_vm1, 1.0, %v5087_v45 }
  0xdb   : > { %v593_v62 = vpack.c.bf16 %v3388_v60, %v3387_v61  ;;  %v4238_v61 = vsub.s32 4, %v4161_v19 }
  0xdc   : > { %v4123_v63 = vpop.permute.xlu1 %876  ;;  %v4125_v0 = vpop.permute.xlu0 %873 }
  0xdd   : > { %5150 = vst [vmem:[#allocation5_spill] sm:$0xff] %v4123_v63  ;;  %5151 = vst [vmem:[#allocation6_spill] sm:$0xff] %v4125_v0  ;;  %vm885_vm3 = vcmp.lt.s32.totalorder %v4042_v42, %v4123_v63  ;;  %vm884_vm5 = vcmp.lt.s32.totalorder %v4042_v42, %v4125_v0  ;;  %3546 = vmatmul.mubr.msk.bf16.gmra.mrb[12].mxu1 %vm626_vm4, %v593_v62 }
  0xde   : > { %v3410_v1 = vsel %vm885_vm3, 1.0, %v5087_v45  ;;  %v3409_v2 = vsel %vm884_vm5, 1.0, %v5087_v45  ;;  %5157 = vst [vmem:[#allocation12_spill] sm:$0xff] %v4238_v61 }
  0xdf   : > { %v900_v3 = vsel %vm896_vm2, %v3410_v1, 0.0  ;;  %v897_v4 = vsel %vm896_vm2, %v3409_v2, 0.0 }
  0xe0   : > { %901 = vadd.xlane.f32.xlu1 %v900_v3  ;;  %v4142_v5 = vpop.permute.xlu1 %882  ;;  %898 = vadd.xlane.f32.xlu0 %v897_v4  ;;  %v4144_v6 = vpop.permute.xlu0 %879 }
  0xe1   : > { %5152 = vst [vmem:[#allocation7_spill] sm:$0xff] %v4142_v5  ;;  %5153 = vst [vmem:[#allocation8_spill] sm:$0xff] %v4144_v6  ;;  %vm887_vm6 = vcmp.lt.s32.totalorder %v4042_v42, %v4142_v5  ;;  %vm886_vm7 = vcmp.lt.s32.totalorder %v4042_v42, %v4144_v6 }
  0xe2   : > { %v3411_v7 = vsel %vm886_vm7, 1.0, %v5087_v45  ;;  %v3412_v9 = vsel %vm887_vm6, 1.0, %v5087_v45 }
  0xe3   : > { %v903_v8 = vsel %vm896_vm2, %v3411_v7, 0.0  ;;  %v906_v10 = vsel %vm896_vm2, %v3412_v9, 0.0 }
  0xe4   : > { %904 = vadd.xlane.f32.xlu0 %v903_v8 }
  0xe8   : > { %907 = vadd.xlane.f32.xlu0 %v906_v10  ;;  %v4257_v10 = vsub.s32 5, %v4161_v19 }
  0xea   : > { %5158 = vst [vmem:[#allocation13_spill] sm:$0xff] %v4257_v10 }
 0x16d   : > { %v902_v11 = vpop.xlane.xlu1 %901  ;;  %v899_v12 = vpop.xlane.xlu0 %898 }
 0x16e   : > { %v910_v13 = vmax.f32 %v902_v11, 1.0  ;;  %v909_v14 = vmax.f32 %v899_v12, 1.0 }
 0x170   : > { %3715 = vrcp.f32 %v910_v13 }
 0x171   : > { %3717 = vrcp.f32 %v909_v14  ;;  %v905_v15 = vpop.xlane.xlu0 %904 }
 0x172   : > { %v911_v16 = vmax.f32 %v905_v15, 1.0 }
 0x174   : > { %3719 = vrcp.f32 %v911_v16 }
 0x175   : > { %v908_v17 = vpop.xlane.xlu0 %907 }
 0x176   : > { %v912_v18 = vmax.f32 %v908_v17, 1.0 }
 0x178   : > { %3721 = vrcp.f32 %v912_v18 }
 0x179   : > { %v4163_v20 = vpop.f32.mrb[0].mxu0 }
 0x17a   : > { %v3716_v21 = vpop.eup %3715  ;;  %v4165_v22 = vpop.f32.mrb[1].mxu0  ;;  %3723 = vtanh.f32 %v4163_v20  ;;  %v3702_v20 = vld [vmem:[%s5085_s7 + $0x18] sm:$0xff]  }
 0x17b   : > { %v3718_v25 = vpop.eup %3717  ;;  %v4173_v26 = vpop.f32.mrb[2].mxu0  ;;  %v4179_v41 = vmul.f32 %v3716_v21, %v3410_v1  ;;  %v4276_v21 = vsub.s32 6, %v4161_v19  ;;  %3725 = vtanh.f32 %v4165_v22 }
 0x17c   : > { %v4175_v27 = vmul.f32 %v3718_v25, %v3409_v2  ;;  %v4177_v28 = vpop.f32.mrb[3].mxu0  ;;  %3727 = vtanh.f32 %v4173_v26 }
 0x17d   : > { %v980_v38 = vrot.slane %v4179_v41, %v4168_v23  ;;  %v987_v44 = vrot.slane %v4179_v41, %v4171_v24  ;;  %v994_v50 = vrot.slane %v4179_v41, %v4186_v31  ;;  %v1001_v1 = vrot.slane %v4179_v41, %v4219_v52  ;;  %5159 = vst [vmem:[#allocation14_spill] sm:$0xff] %v4276_v21 }
 0x17e   : > { %v931_v29 = vrot.slane %v4175_v27, %v4171_v24  ;;  %v924_v30 = vrot.slane %v4175_v27, %v4168_v23  ;;  %v3720_v32 = vpop.eup %3719  ;;  %v938_v37 = vrot.slane %v4175_v27, %v4186_v31  ;;  %v945_v55 = vrot.slane %v4175_v27, %v4219_v52 }
 0x17f   : > { %v4192_v35 = vmul.f32 %v3720_v32, %v3411_v7  ;;  %v952_v2 = vrot.slane %v4175_v27, %v4238_v61  ;;  %v1008_v12 = vrot.slane %v4179_v41, %v4238_v61  ;;  %v959_v13 = vrot.slane %v4175_v27, %v4257_v10 }
 0x180   : > { %933 = vbcast.lane.b32.xlu0 %v931_v29, 256  ;;  %926 = vbcast.lane.b32.xlu1 %v924_v30, 256  ;;  %v4188_v33 = vpop.f32.mrb[0].mxu1  ;;  %v1015_v29 = vrot.slane %v4179_v41, %v4257_v10  ;;  %v966_v30 = vrot.slane %v4175_v27, %v4276_v21  ;;  %3729 = vtanh.f32 %v4177_v28 }
 0x181   : > { %v4190_v34 = vpop.f32.mrb[1].mxu1  ;;  %v1036_v46 = vrot.slane %v4192_v35, %v4168_v23  ;;  %v1043_v54 = vrot.slane %v4192_v35, %v4171_v24  ;;  %v1050_v60 = vrot.slane %v4192_v35, %v4186_v31  ;;  %v1064_v18 = vrot.slane %v4192_v35, %v4238_v61 }
 0x182   : > { %v4194_v36 = vpop.f32.mrb[2].mxu1  ;;  %v3722_v39 = vpop.eup %3721  ;;  %3731 = vtanh.f32 %v4188_v33 }
 0x183   : > { %v4200_v40 = vpop.f32.mrb[3].mxu1  ;;  %v4202_v43 = vmul.f32 %v3722_v39, %v3412_v9  ;;  %v1057_v9 = vrot.slane %v4192_v35, %v4219_v52  ;;  %3733 = vtanh.f32 %v4190_v34 }
 0x184   : > { %940 = vbcast.lane.b32.xlu0 %v938_v37, 256  ;;  %982 = vbcast.lane.b32.xlu1 %v980_v38, 256  ;;  %3735 = vtanh.f32 %v4194_v36  ;;  %v4380_v22 = vpop.eup %3723 }
 0x185   : > { %v1092_v51 = vrot.slane %v4202_v43, %v4168_v23  ;;  %v1099_v59 = vrot.slane %v4202_v43, %v4171_v24  ;;  %v1106_v8 = vrot.slane %v4202_v43, %v4186_v31  ;;  %v1113_v17 = vrot.slane %v4202_v43, %v4219_v52  ;;  %5161 = vst [vmem:[#allocation16_spill] sm:$0xff] %v4380_v22  ;;  %v4383_v26 = vpop.eup %3725 }
 0x186   : > { %v1120_v39 = vrot.slane %v4202_v43, %v4238_v61  ;;  %3737 = vtanh.f32 %v4200_v40  ;;  %v4386_v28 = vpop.eup %3727 }
 0x187   : > { %5162 = vst [vmem:[#allocation17_spill] sm:$0xff] %v4386_v28 }
 0x188   : > { %989 = vbcast.lane.b32.xlu1 %v987_v44, 256  ;;  %1038 = vbcast.lane.b32.xlu0 %v1036_v46, 256  ;;  %v4208_v47 = vpop.f32.mrb[4].mxu0  ;;  %v1071_v44 = vrot.slane %v4192_v35, %v4257_v10  ;;  %v4295_v46 = vsub.s32 7, %v4161_v19 }
 0x189   : > { %v4210_v48 = vpop.f32.mrb[5].mxu0 }
 0x18a   : > { %v4212_v49 = vpop.f32.mrb[6].mxu0  ;;  %5160 = vst [vmem:[#allocation15_spill] sm:$0xff] %v4295_v46  ;;  %v4389_v33 = vpop.eup %3729 }
 0x18b   : > { %v4221_v53 = vpop.f32.mrb[7].mxu0  ;;  %5163 = vst [vmem:[#allocation18_spill] sm:$0xff] %v4389_v33 }
 0x18c   : > { %996 = vbcast.lane.b32.xlu1 %v994_v50, 256  ;;  %1094 = vbcast.lane.b32.xlu0 %v1092_v51, 256  ;;  %v1022_v51 = vrot.slane %v4179_v41, %v4276_v21  ;;  %v4392_v34 = vpop.eup %3731 }
 0x18d   : > { %5164 = vst [vmem:[#allocation19_spill] sm:$0xff] %v4392_v34 }
 0x190   : > { %1045 = vbcast.lane.b32.xlu1 %v1043_v54, 256  ;;  %947 = vbcast.lane.b32.xlu0 %v945_v55, 256  ;;  %v4227_v56 = vpop.f32.mrb[4].mxu1  ;;  %v973_v54 = vrot.slane %v4175_v27, %v4295_v46 }
 0x191   : > { %v4229_v57 = vpop.f32.mrb[5].mxu1 }
 0x192   : > { %v4231_v58 = vpop.f32.mrb[6].mxu1 }
 0x193   : > { %v4240_v62 = vpop.f32.mrb[7].mxu1 }
 0x194   : > { %1101 = vbcast.lane.b32.xlu1 %v1099_v59, 256  ;;  %1052 = vbcast.lane.b32.xlu0 %v1050_v60, 256  ;;  %v3687_v60 = vld [vmem:[%s5083_s5] sm:$0xff]  }
 0x195   : > { %3549 = vmatprep.subr.bf16.mxu1 %v3687_v60 }
 0x196   : > { %3550 = vmatpush3.bf16.msra.mxu1 %v3687_v60  ;;  %v3694_v60 = vld [vmem:[%s5083_s5 + $0x38] sm:$0xff]  }
 0x198   : > { %1003 = vbcast.lane.b32.xlu1 %v1001_v1, 256  ;;  %954 = vbcast.lane.b32.xlu0 %v952_v2, 256  ;;  %v4246_v3 = vpop.f32.mrb[8].mxu0  ;;  %v1127_v2 = vrot.slane %v4202_v43, %v4257_v10 }
 0x199   : > { %v4248_v4 = vpop.f32.mrb[9].mxu0 }
 0x19a   : > { %v4250_v7 = vpop.f32.mrb[10].mxu0  ;;  %3739 = vtanh.f32 %v4248_v4 }
 0x19b   : > { %v4259_v11 = vpop.f32.mrb[11].mxu0  ;;  %3741 = vtanh.f32 %v4208_v47  ;;  %v4395_v47 = vpop.eup %3733 }
 0x19c   : > { %1108 = vbcast.lane.b32.xlu1 %v1106_v8, 256  ;;  %1059 = vbcast.lane.b32.xlu0 %v1057_v9, 256  ;;  %v1078_v8 = vrot.slane %v4192_v35, %v4276_v21  ;;  %v3688_v9 = vld [vmem:[%s5083_s5 + $0x8] sm:$0xff]   ;;  %3743 = vtanh.f32 %v4210_v48 }
 0x19d   : > { %3551 = vmatprep.subr.bf16.mxu1 %v3688_v9  ;;  %3745 = vtanh.f32 %v4212_v49 }
 0x19e   : > { %3552 = vmatpush3.bf16.msra.mxu1 %v3688_v9  ;;  %v3700_v9 = vld [vmem:[%s5085_s7 + $0x8] sm:$0xff]   ;;  %3747 = vtanh.f32 %v4221_v53  ;;  %v4400_v53 = vpop.eup %3735 }
 0x19f   : > { %3749 = vtanh.f32 %v4259_v11  ;;  %5165 = vst [vmem:[#allocation20_spill] sm:$0xff] %v4400_v53  ;;  %v4403_v4 = vpop.eup %3737 }
 0x1a0   : > { %1010 = vbcast.lane.b32.xlu1 %v1008_v12, 256  ;;  %961 = vbcast.lane.b32.xlu0 %v959_v13, 256  ;;  %v4265_v14 = vpop.f32.mrb[8].mxu1  ;;  %v1029_v12 = vrot.slane %v4179_v41, %v4295_v46  ;;  %v1085_v13 = vrot.slane %v4192_v35, %v4295_v46  ;;  %v1134_v41 = vrot.slane %v4202_v43, %v4276_v21  ;;  %v1371_v35 = vld [vmem:[%s342_s12 + $0x10] sm:$0xff]  ;;  %3751 = vtanh.f32 %v4227_v56 }
 0x1a1   : > { %v4267_v15 = vpop.f32.mrb[9].mxu1  ;;  %3753 = vtanh.f32 %v4229_v57  ;;  %5166 = vst [vmem:[#allocation21_spill] sm:$0xff] %v4403_v4 }
 0x1a2   : > { %v4269_v16 = vpop.f32.mrb[10].mxu1  ;;  %3755 = vtanh.f32 %v4246_v3 }
 0x1a3   : > { %v4278_v25 = vpop.f32.mrb[11].mxu1  ;;  %3757 = vtanh.f32 %v4267_v15 }
 0x1a4   : > { %1115 = vbcast.lane.b32.xlu1 %v1113_v17, 256  ;;  %1066 = vbcast.lane.b32.xlu0 %v1064_v18, 256  ;;  %v1369_v17 = vld [vmem:[%s342_s12] sm:$0xff]  ;;  %v3689_v18 = vld [vmem:[%s5083_s5 + $0x10] sm:$0xff]   ;;  %3759 = vtanh.f32 %v4231_v58 }
 0x1a5   : > { %3553 = vmatprep.subr.bf16.mxu1 %v3689_v18  ;;  %3761 = vtanh.f32 %v4240_v62 }
 0x1a6   : > { %3554 = vmatpush3.bf16.msra.mxu1 %v3689_v18  ;;  %3763 = vtanh.f32 %v4250_v7 }
 0x1a7   : > { %3765 = vtanh.f32 %v4265_v14 }
 0x1a8   : > { %1017 = vbcast.lane.b32.xlu1 %v1015_v29, 256  ;;  %968 = vbcast.lane.b32.xlu0 %v966_v30, 256  ;;  %v4284_v32 = vpop.f32.mrb[12].mxu0  ;;  %v3690_v29 = vld [vmem:[%s5083_s5 + $0x18] sm:$0xff]   ;;  %v1141_v30 = vrot.slane %v4202_v43, %v4295_v46  ;;  %v3693_v43 = vld [vmem:[%s5083_s5 + $0x30] sm:$0xff]   ;;  %3767 = vtanh.f32 %v4269_v16 }
 0x1a9   : > { %v4286_v37 = vpop.f32.mrb[13].mxu0  ;;  %3555 = vmatprep.subr.bf16.mxu1 %v3690_v29  ;;  %3769 = vtanh.f32 %v4278_v25 }
 0x1aa   : > { %v4288_v38 = vpop.f32.mrb[14].mxu0  ;;  %3556 = vmatpush3.bf16.msra.mxu1 %v3690_v29 }
 0x1ab   : > { %v4297_v50 = vpop.f32.mrb[15].mxu0 }
 0x1ac   : > { %1122 = vbcast.lane.b32.xlu1 %v1120_v39, 256  ;;  %1073 = vbcast.lane.b32.xlu0 %v1071_v44, 256  ;;  %v1370_v39 = vld [vmem:[%s342_s12 + $0x8] sm:$0xff]  ;;  %v3691_v44 = vld [vmem:[%s5083_s5 + $0x20] sm:$0xff]  }
 0x1ad   : > { %3557 = vmatprep.subr.bf16.mxu1 %v3691_v44 }
 0x1ae   : > { %3558 = vmatpush3.bf16.msra.mxu1 %v3691_v44 }
 0x1b0   : > { %1024 = vbcast.lane.b32.xlu1 %v1022_v51, 256  ;;  %975 = vbcast.lane.b32.xlu0 %v973_v54, 256  ;;  %v4303_v55 = vpop.f32.mrb[12].mxu1  ;;  %v1372_v51 = vld [vmem:[%s342_s12 + $0x18] sm:$0xff]  ;;  %v3692_v54 = vld [vmem:[%s5083_s5 + $0x28] sm:$0xff]   ;;  %s329_s12 = sand.u32 1, %s3873_s28  }
 0x1b1   : > { %v4305_v59 = vpop.f32.mrb[13].mxu1  ;;  %3559 = vmatprep.subr.bf16.mxu1 %v3692_v54  ;;  %s3350_s19 = sshll.u32 %s329_s12, 5  ;;  %s5037_s9 = scalar_lea.sflag [#allocation3], %s329_s12 }
 0x1b2   : > { %v4310_v1 = vpop.f32.mrb[14].mxu1  ;;  %3560 = vmatpush3.bf16.msra.mxu1 %v3692_v54  ;;  %s331_s20 = scalar_lea.vmem [#allocation2], %s3350_s19 }
 0x1b3   : > { %v4316_v27 = vpop.f32.mrb[15].mxu1  ;;  %3561 = vmatprep.subr.bf16.mxu1 %v3693_v43  ;;  %s3260_s18 = sshll.u32 %s331_s20, 4  ;;  %s5035_s18 = int_to_ptr.vmem [resolvable:$true] %s3260_s18 }
 0x1b4   : > { %1129 = vbcast.lane.b32.xlu1 %v1127_v2, 256  ;;  %1080 = vbcast.lane.b32.xlu0 %v1078_v8, 256  ;;  %v4355_v2 = vld [vmem:[%s5082_s4] sm:$0xff]   ;;  %s3819_s24 = scalar_lea.vmem %s5035_s18, 512  ;;  %p3826_p1 = scmp.lt.s32.totalorder %s5035_s18, %s3824_s26 }
 0x1b5   : > { %v3699_v8 = vld [vmem:[%s5085_s7] sm:$0xff]   ;;  %p3820_p12 = scmp.ne.s32.totalorder %s5035_s18, %s3819_s24  ;;  %p3827_p2 = scmp.lt.s32.totalorder %s3825_s10, %s3819_s24 }
 0x1b6   : > { %3562 = vmatpush3.bf16.msra.mxu1 %v3693_v43  ;;  %3581 = vmatprep.subr.bf16.mxu0 %v3699_v8 }
 0x1b7   : > { %3563 = vmatprep.subr.bf16.mxu1 %v3694_v60  ;;  %3582 = vmatpush3.bf16.msra.mxu0 %v3699_v8  ;;  %p3821_p13 = pnand %p3820_p12, %p3972_p5  ;;  %p3828_p3 = por %p3827_p2, %p3826_p1 }
 0x1b8   : > { %1031 = vbcast.lane.b32.xlu1 %v1029_v12, 256  ;;  %1087 = vbcast.lane.b32.xlu0 %v1085_v13, 256  ;;  %v3701_v12 = vld [vmem:[%s5085_s7 + $0x10] sm:$0xff]   ;;  %v4406_v13 = vpop.eup %3739  ;;  %3771 = vtanh.f32 %v4284_v32 }
 0x1b9   : > { %3583 = vmatprep.subr.bf16.mxu0 %v3700_v9  ;;  %5167 = vst [vmem:[#allocation22_spill] sm:$0xff] %v4406_v13  ;;  %v4409_v18 = vpop.eup %3741  ;;  %3773 = vtanh.f32 %v4286_v37  ;;  %p3822_p0 = pneg %p3821_p13 }
 0x1ba   : > { %3564 = vmatpush3.bf16.msra.mxu1 %v3694_v60  ;;  %5168 = vst [vmem:[#allocation23_spill] sm:$0xff] %v4409_v18 }
 0x1bb   : > { %3569 = vmatprep.subr.bf16.mxu1 %v4355_v2  ;;  %3584 = vmatpush3.bf16.msra.mxu0 %v3700_v9  ;;  %p3829_p4 = pnand %p3828_p3, %p3822_p0 }
 0x1bc   : > { %1136 = vbcast.lane.b32.xlu1 %v1134_v41, 256  ;;  %1374 = vperm.xlu0 %3681, %v1369_v17  }
 0x1bd   : > { %3585 = vmatprep.subr.bf16.mxu0 %v3701_v12 }
 0x1bf   : > { %3586 = vmatpush3.bf16.msra.mxu0 %v3701_v12 }
 0x1c0   : > { %1143 = vbcast.lane.b32.xlu1 %v1141_v30, 256  ;;  %1380 = vperm.xlu0 %3681, %v1371_v35   ;;  %v4413_v30 = vpop.eup %3743  ;;  %3775 = vtanh.f32 %v4288_v38 }
 0x1c1   : > { %3587 = vmatprep.subr.bf16.mxu0 %v3702_v20  ;;  %5169 = vst [vmem:[#allocation24_spill] sm:$0xff] %v4413_v30  ;;  %v4416_v15 = vpop.eup %3745  ;;  %3777 = vtanh.f32 %v4297_v50 }
 0x1c2   : > { %v4418_v54 = vpop.eup %3747  ;;  %3779 = vtanh.f32 %v4303_v55 }
 0x1c3   : > { %3588 = vmatpush3.bf16.msra.mxu0 %v3702_v20  ;;  %5170 = vst [vmem:[#allocation25_spill] sm:$0xff] %v4418_v54  ;;  %v4421_v8 = vpop.eup %3749  ;;  %3781 = vtanh.f32 %v4305_v59 }
 0x1c4   : > { %1377 = vperm.xlu1 %3682, %v1370_v39   ;;  %5171 = vst [vmem:[#allocation26_spill] sm:$0xff] %v4421_v8 }
 0x1c8   : > { %1383 = vperm.xlu1 %3682, %v1372_v51  }
 0x1f2   : > { %v927_v36 = vpop.permute.xlu1 %926  ;;  %v934_v40 = vpop.permute.xlu0 %933 }
 0x1f3   : > { %v1145_v48 = vmul.f32 %v4383_v26, %v927_v36  ;;  %v1146_v49 = vmul.f32 %v4389_v33, %v934_v40  ;;  %v4423_v40 = vpop.eup %3751  ;;  %3783 = vtanh.f32 %v4310_v1 }
 0x1f4   : > { %5172 = vst [vmem:[#allocation27_spill] sm:$0xff] %v4423_v40 }
 0x1f5   : > { %v1177_v11 = vrot.slane %v1145_v48, 4  ;;  %v1183_v56 = vrot.slane %v1146_v49, 4 }
 0x1f6   : > { %v983_v17 = vpop.permute.xlu1 %982  ;;  %v941_v57 = vpop.permute.xlu0 %940 }
 0x1f7   : > { %v1178_v41 = vadd.f32 %v1177_v11, %v1145_v48  ;;  %v1184_v35 = vadd.f32 %v1183_v56, %v1146_v49  ;;  %v1153_v29 = vmul.f32 %v4406_v13, %v983_v17  ;;  %v1147_v3 = vmul.f32 %v4380_v22, %v941_v57  ;;  %v4428_v49 = vpop.eup %3753 }
 0x1f8   : > { %v4431_v11 = vpop.eup %3755  ;;  %3785 = vtanh.f32 %v4316_v27 }
 0x1f9   : > { %v1179_v39 = vrot.slane %v1178_v41, 2  ;;  %v1185_v44 = vrot.slane %v1184_v35, 2  ;;  %v1225_v51 = vrot.slane %v1153_v29, 4  ;;  %v1189_v58 = vrot.slane %v1147_v3, 4  ;;  %5173 = vst [vmem:[#allocation28_spill] sm:$0xff] %v4431_v11 }
 0x1fa   : > { %v990_v43 = vpop.permute.xlu1 %989  ;;  %v1039_v60 = vpop.permute.xlu0 %1038 }
 0x1fb   : > { %v1180_v9 = vadd.f32 %v1179_v39, %v1178_v41  ;;  %v1186_v12 = vadd.f32 %v1185_v44, %v1184_v35  ;;  %v1226_v20 = vadd.f32 %v1225_v51, %v1153_v29  ;;  %v1190_v36 = vadd.f32 %v1189_v58, %v1147_v3  ;;  %v4434_v29 = vpop.eup %3757 }
 0x1fc   : > { %v1154_v62 = vmul.f32 %v4421_v8, %v990_v43  ;;  %v1161_v48 = vmul.f32 %v4395_v47, %v1039_v60  ;;  %v4437_v39 = vpop.eup %3759 }
 0x1fd   : > { %v1181_v7 = vrot.slane %v1180_v9, 1  ;;  %v1187_v56 = vrot.slane %v1186_v12, 1  ;;  %v1227_v14 = vrot.slane %v1226_v20, 2  ;;  %v1191_v3 = vrot.slane %v1190_v36, 2  ;;  %5174 = vst [vmem:[#allocation29_spill] sm:$0xff] %v4437_v39  ;;  %v4442_v43 = vpop.eup %3761 }
 0x1fe   : > { %v1231_v17 = vrot.slane %v1154_v62, 4  ;;  %v1273_v57 = vrot.slane %v1161_v48, 4  ;;  %v997_v41 = vpop.permute.xlu1 %996  ;;  %v1095_v35 = vpop.permute.xlu0 %1094 }
 0x1ff   : > { %v1155_v51 = vmul.f32 %v4431_v11, %v997_v41  ;;  %v1169_v58 = vmul.f32 %v4434_v29, %v1095_v35  ;;  %v1182_v25 = vadd.f32 %v1181_v7, %v1180_v9  ;;  %v1188_v60 = vadd.f32 %v1187_v56, %v1186_v12  ;;  %v4445_v61 = vpop.eup %3763 }
 0x200   : > { %v1232_v44 = vadd.f32 %v1231_v17, %v1154_v62  ;;  %v1274_v16 = vadd.f32 %v1273_v57, %v1161_v48  ;;  %5175 = vst [vmem:[#allocation30_spill] sm:$0xff] %v4445_v61  ;;  %v1228_v62 = vadd.f32 %v1227_v14, %v1226_v20  ;;  %v1192_v48 = vadd.f32 %v1191_v3, %v1190_v36  ;;  %v4449_v7 = vpop.eup %3765 }
 0x201   : > { %v1237_v46 = vrot.slane %v1155_v51, 4  ;;  %v1321_v21 = vrot.slane %v1169_v58, 4  ;;  %5176 = vst [vmem:[#allocation31_spill] sm:$0xff] %v4449_v7  ;;  %v1407_v12 = vpack.c.bf16 %v1182_v25, %v1182_v25  ;;  %v1408_v56 = vpack.c.bf16 %v1188_v60, %v1188_v60  ;;  %v4451_v38 = vpop.eup %3767 }
 0x202   : > { %v1233_v45 = vrot.slane %v1232_v44, 2  ;;  %v1046_v32 = vpop.permute.xlu1 %1045  ;;  %v948_v10 = vpop.permute.xlu0 %947  ;;  %v1275_v17 = vrot.slane %v1274_v16, 2  ;;  %v1193_v36 = vrot.slane %v1192_v48, 1 }
 0x203   : > { %v1238_v57 = vadd.f32 %v1237_v46, %v1155_v51  ;;  %v1322_v37 = vadd.f32 %v1321_v21, %v1169_v58  ;;  %v1162_v9 = vmul.f32 %v4403_v4, %v1046_v32  ;;  %v1148_v46 = vmul.f32 %v4386_v28, %v948_v10  ;;  %v4455_v50 = vpop.eup %3769 }
 0x204   : > { %v1234_v41 = vadd.f32 %v1233_v45, %v1232_v44  ;;  %5177 = vst [vmem:[#allocation32_spill] sm:$0xff] %v4455_v50  ;;  %v1229_v21 = vrot.slane %v1228_v62, 1  ;;  %v1276_v14 = vadd.f32 %v1275_v17, %v1274_v16  ;;  %v4458_v3 = vpop.eup %3771  ;;  %v1487_v25 = vunpack.c.l.b16 %v1407_v12 }
 0x205   : > { %v1239_v35 = vrot.slane %v1238_v57, 2  ;;  %v1279_v20 = vrot.slane %v1162_v9, 4  ;;  %5178 = vst [vmem:[#allocation33_spill] sm:$0xff] %v4458_v3  ;;  %v1323_v45 = vrot.slane %v1322_v37, 2  ;;  %v1195_v51 = vrot.slane %v1148_v46, 4  ;;  %v4461_v5 = vpop.eup %3773 }
 0x206   : > { %v1102_v52 = vpop.permute.xlu1 %1101  ;;  %v1053_v31 = vpop.permute.xlu0 %1052  ;;  %v1488_v55 = vunpack.c.l.b16 %v1408_v56  ;;  %v1235_v60 = vrot.slane %v1234_v41, 1  ;;  %v1230_v17 = vadd.f32 %v1229_v21, %v1228_v62 }
 0x207   : > { %v1280_v44 = vadd.f32 %v1279_v20, %v1162_v9  ;;  %v1170_v58 = vmul.f32 %v4455_v50, %v1102_v52  ;;  %v1240_v32 = vadd.f32 %v1239_v35, %v1238_v57  ;;  %v1196_v59 = vadd.f32 %v1195_v51, %v1148_v46  ;;  %v4465_v0 = vpop.eup %3775 }
 0x208   : > { %v1163_v16 = vmul.f32 %v4392_v34, %v1053_v31  ;;  %v1194_v9 = vadd.f32 %v1193_v36, %v1192_v48  ;;  %v1277_v20 = vrot.slane %v1276_v14, 1  ;;  %5179 = vst [vmem:[#allocation34_spill] sm:$0xff] %v4465_v0  ;;  %v1324_v52 = vadd.f32 %v1323_v45, %v1322_v37  ;;  %v4470_v1 = vpop.eup %3777 }
 0x209   : > { %v1281_v63 = vrot.slane %v1280_v44, 2  ;;  %v1327_v6 = vrot.slane %v1170_v58, 4  ;;  %v1520_v35 = vsel %vm1519_vm8, %v1488_v55, %v1487_v25  ;;  %v1197_v46 = vrot.slane %v1196_v59, 2  ;;  %5180 = vst [vmem:[#allocation35_spill] sm:$0xff] %v4470_v1  ;;  %v4473_v27 = vpop.eup %3779 }
 0x20a   : > { %v1004_v24 = vpop.permute.xlu1 %1003  ;;  %v955_v10 = vpop.permute.xlu0 %954  ;;  %v1285_v57 = vrot.slane %v1163_v16, 4  ;;  %v1236_v62 = vadd.f32 %v1235_v60, %v1234_v41  ;;  %v1241_v48 = vrot.slane %v1240_v32, 1  ;;  %v1415_v37 = vpack.c.bf16 %v1230_v17, %v1230_v17 }
 0x20b   : > { %v1282_v12 = vadd.f32 %v1281_v63, %v1280_v44  ;;  %v1328_v56 = vadd.f32 %v1327_v6, %v1170_v58  ;;  %v1156_v51 = vmul.f32 %v4445_v61, %v1004_v24  ;;  %v1409_v63 = vpack.c.bf16 %v1194_v9, %v1194_v9  ;;  %v4475_v24 = vpop.eup %3781 }
 0x20c   : > { %v1286_v36 = vadd.f32 %v1285_v57, %v1163_v16  ;;  %v1149_v45 = vmul.f32 %v4413_v30, %v955_v10  ;;  %v1278_v44 = vadd.f32 %v1277_v20, %v1276_v14  ;;  %v1325_v58 = vrot.slane %v1324_v52, 1 }
 0x20d   : > { %v1329_v21 = vrot.slane %v1328_v56, 2  ;;  %v1243_v6 = vrot.slane %v1156_v51, 4  ;;  %v1283_v25 = vrot.slane %v1282_v12, 1  ;;  %v1198_v61 = vadd.f32 %v1197_v46, %v1196_v59  ;;  %v4479_v59 = vpop.eup %3783 }
 0x20e   : > { %v1109_v31 = vpop.permute.xlu1 %1108  ;;  %v1060_v28 = vpop.permute.xlu0 %1059  ;;  %v1287_v55 = vrot.slane %v1286_v36, 2  ;;  %v1201_v8 = vrot.slane %v1149_v45, 4  ;;  %v1416_v17 = vpack.c.bf16 %v1236_v62, %v1236_v62  ;;  %v1242_v9 = vadd.f32 %v1241_v48, %v1240_v32  ;;  %5181 = vst [vmem:[#allocation36_spill] sm:$0xff] %v4479_v59 }
 0x20f   : > { %v1244_v11 = vadd.f32 %v1243_v6, %v1156_v51  ;;  %v1171_v41 = vmul.f32 %v4449_v7, %v1109_v31  ;;  %v1330_v57 = vadd.f32 %v1329_v21, %v1328_v56  ;;  %v1164_v14 = vmul.f32 %v4400_v53, %v1060_v28 }
 0x210   : > { %v1288_v22 = vadd.f32 %v1287_v55, %v1286_v36  ;;  %v1202_v30 = vadd.f32 %v1201_v8, %v1149_v45  ;;  %v1495_v20 = vunpack.c.l.b16 %v1415_v37  ;;  %v1489_v50 = vunpack.c.l.b16 %v1409_v63  ;;  %v4481_v8 = vpop.eup %3785 }
 0x211   : > { %v1245_v10 = vrot.slane %v1244_v11, 2  ;;  %v1333_v33 = vrot.slane %v1171_v41, 4  ;;  %v1423_v13 = vpack.c.bf16 %v1278_v44, %v1278_v44  ;;  %v1326_v34 = vadd.f32 %v1325_v58, %v1324_v52 }
 0x212   : > { %v1011_v60 = vpop.permute.xlu1 %1010  ;;  %v962_v16 = vpop.permute.xlu0 %961  ;;  %v1284_v46 = vadd.f32 %v1283_v25, %v1282_v12  ;;  %v1199_v51 = vrot.slane %v1198_v61, 1  ;;  %v1291_v6 = vrot.slane %v1164_v14, 4  ;;  %v1496_v32 = vunpack.c.l.b16 %v1416_v17 }
 0x213   : > { %v1334_v31 = vadd.f32 %v1333_v33, %v1171_v41  ;;  %v1417_v56 = vpack.c.bf16 %v1242_v9, %v1242_v9  ;;  %v1331_v48 = vrot.slane %v1330_v57, 1  ;;  %v1289_v21 = vrot.slane %v1288_v22, 1 }
 0x214   : > { %v1246_v36 = vadd.f32 %v1245_v10, %v1244_v11  ;;  %v1203_v28 = vrot.slane %v1202_v30, 2  ;;  %v1292_v63 = vadd.f32 %v1291_v6, %v1164_v14  ;;  %v4484_v52 = vsel %vm1521_vm9, %v1489_v50, %v1520_v35 }
 0x215   : > { %v1335_v37 = vrot.slane %v1334_v31, 2  ;;  %v1503_v45 = vunpack.c.l.b16 %v1423_v13  ;;  %v1431_v12 = vpack.c.bf16 %v1326_v34, %v1326_v34  ;;  %v1157_v33 = vmul.f32 %v4461_v5, %v1011_v60 }
 0x216   : > { %v1116_v7 = vpop.permute.xlu1 %1115  ;;  %v1067_v62 = vpop.permute.xlu0 %1066  ;;  %v1424_v44 = vpack.c.bf16 %v1284_v46, %v1284_v46  ;;  %v1200_v58 = vadd.f32 %v1199_v51, %v1198_v61  ;;  %v1293_v55 = vrot.slane %v1292_v63, 2  ;;  %v1533_v9 = vsel %vm1519_vm8, %v1496_v32, %v1495_v20 }
 0x217   : > { %v1336_v25 = vadd.f32 %v1335_v37, %v1334_v31  ;;  %v1497_v53 = vunpack.c.l.b16 %v1417_v56  ;;  %v1249_v11 = vrot.slane %v1157_v33, 4  ;;  %v1150_v10 = vmul.f32 %v4418_v54, %v962_v16 }
 0x218   : > { %v1332_v14 = vadd.f32 %v1331_v48, %v1330_v57  ;;  %v1290_v6 = vadd.f32 %v1289_v21, %v1288_v22  ;;  %v1247_v50 = vrot.slane %v1246_v36, 1  ;;  %v1204_v35 = vadd.f32 %v1203_v28, %v1202_v30 }
 0x219   : > { %v1511_v13 = vunpack.c.l.b16 %v1431_v12  ;;  %v1250_v34 = vadd.f32 %v1249_v11, %v1157_v33  ;;  %v1207_v4 = vrot.slane %v1150_v10, 4  ;;  %v1172_v60 = vmul.f32 %v4451_v38, %v1116_v7 }
 0x21a   : > { %v1018_v41 = vpop.permute.xlu1 %1017  ;;  %v969_v17 = vpop.permute.xlu0 %968  ;;  %v1504_v61 = vunpack.c.l.b16 %v1424_v44  ;;  %v1410_v46 = vpack.c.bf16 %v1200_v58, %v1200_v58  ;;  %v1337_v51 = vrot.slane %v1336_v25, 1  ;;  %v1294_v31 = vadd.f32 %v1293_v55, %v1292_v63 }
 0x21b   : > { %v1251_v20 = vrot.slane %v1250_v34, 2  ;;  %v1208_v32 = vadd.f32 %v1207_v4, %v1150_v10  ;;  %v1339_v56 = vrot.slane %v1172_v60, 4  ;;  %v1165_v16 = vmul.f32 %v4428_v49, %v1067_v62 }
 0x21c   : > { %v1432_v22 = vpack.c.bf16 %v1332_v14, %v1332_v14  ;;  %v1425_v48 = vpack.c.bf16 %v1290_v6, %v1290_v6  ;;  %v1248_v30 = vadd.f32 %v1247_v50, %v1246_v36  ;;  %v1205_v21 = vrot.slane %v1204_v35, 1 }
 0x21d   : > { %v1252_v28 = vadd.f32 %v1251_v20, %v1250_v34  ;;  %v1209_v12 = vrot.slane %v1208_v32, 2  ;;  %v1340_v33 = vadd.f32 %v1339_v56, %v1172_v60  ;;  %v1297_v7 = vrot.slane %v1165_v16, 4 }
 0x21e   : > { %v1123_v37 = vpop.permute.xlu1 %1122  ;;  %v1074_v57 = vpop.permute.xlu0 %1073  ;;  %v1338_v44 = vadd.f32 %v1337_v51, %v1336_v25  ;;  %v1295_v11 = vrot.slane %v1294_v31, 1  ;;  %v1158_v58 = vmul.f32 %v4470_v1, %v1018_v41  ;;  %v1151_v63 = vmul.f32 %v4409_v18, %v969_v17 }
 0x21f   : > { %v1253_v4 = vrot.slane %v1252_v28, 1  ;;  %v1210_v10 = vadd.f32 %v1209_v12, %v1208_v32  ;;  %v1341_v54 = vrot.slane %v1340_v33, 2  ;;  %v1298_v62 = vadd.f32 %v1297_v7, %v1165_v16 }
 0x220   : > { %v1534_v14 = vsel %vm1521_vm9, %v1497_v53, %v1533_v9  ;;  %v1540_v36 = vsel %vm1519_vm8, %v1504_v61, %v1503_v45  ;;  %v1255_v6 = vrot.slane %v1158_v58, 4  ;;  %v1213_v50 = vrot.slane %v1151_v63, 4 }
 0x221   : > { %v1490_v34 = vunpack.c.l.b16 %v1410_v46  ;;  %v1512_v60 = vunpack.c.l.b16 %v1432_v22  ;;  %v1418_v20 = vpack.c.bf16 %v1248_v30, %v1248_v30  ;;  %v1211_v25 = vrot.slane %v1210_v10, 1 }
 0x222   : > { %v1025_v55 = vpop.permute.xlu1 %1024  ;;  %v976_v51 = vpop.permute.xlu0 %975  ;;  %v1505_v56 = vunpack.c.l.b16 %v1425_v48  ;;  %v1342_v41 = vadd.f32 %v1341_v54, %v1340_v33  ;;  %v1299_v1 = vrot.slane %v1298_v62, 2  ;;  %v1173_v17 = vmul.f32 %v4475_v24, %v1123_v37 }
 0x223   : > { %v1206_v18 = vadd.f32 %v1205_v21, %v1204_v35  ;;  %v1433_v32 = vpack.c.bf16 %v1338_v44, %v1338_v44  ;;  %v1296_v12 = vadd.f32 %v1295_v11, %v1294_v31  ;;  %v1254_v16 = vadd.f32 %v1253_v4, %v1252_v28 }
 0x224   : > { %v1256_v53 = vadd.f32 %v1255_v6, %v1158_v58  ;;  %v1214_v9 = vadd.f32 %v1213_v50, %v1151_v63  ;;  %v1345_v45 = vrot.slane %v1173_v17, 4  ;;  %v1166_v61 = vmul.f32 %v4442_v43, %v1074_v57 }
 0x225   : > { %v4499_v46 = vsel %vm1523_vm10, %v1490_v34, %v4484_v52  ;;  %v1547_v22 = vsel %vm1519_vm8, %v1512_v60, %v1511_v13  ;;  %v1498_v54 = vunpack.c.l.b16 %v1418_v20  ;;  %v1212_v48 = vadd.f32 %v1211_v25, %v1210_v10 }
 0x226   : > { %v1130_v7 = vpop.permute.xlu1 %1129  ;;  %v1343_v30 = vrot.slane %v1342_v41, 1  ;;  %v1300_v37 = vadd.f32 %v1299_v1, %v1298_v62  ;;  %v1346_v35 = vadd.f32 %v1345_v45, %v1173_v17  ;;  %v1303_v21 = vrot.slane %v1166_v61, 4  ;;  %v1081_v57 = vpop.permute.xlu0 %1080 }
 0x227   : > { %v4503_v31 = vsel %vm1521_vm9, %v1505_v56, %v1540_v36  ;;  %v1411_v28 = vpack.c.bf16 %v1206_v18, %v1206_v18  ;;  %v1513_v33 = vunpack.c.l.b16 %v1433_v32  ;;  %v1159_v44 = vmul.f32 %v4458_v3, %v1025_v55 }
 0x228   : > { %v1426_v11 = vpack.c.bf16 %v1296_v12, %v1296_v12  ;;  %v1419_v58 = vpack.c.bf16 %v1254_v16, %v1254_v16  ;;  %v1257_v52 = vrot.slane %v1256_v53, 2  ;;  %v1215_v63 = vrot.slane %v1214_v9, 2 }
 0x229   : > { %v4507_v13 = vsel %vm1523_vm10, %v1498_v54, %v1534_v14  ;;  %v1347_v4 = vrot.slane %v1346_v35, 2  ;;  %v1261_v10 = vrot.slane %v1159_v44, 4  ;;  %v1152_v1 = vmul.f32 %v4416_v15, %v976_v51 }
 0x22a   : > { %v1032_v62 = vpop.permute.xlu1 %1031  ;;  %v1412_v6 = vpack.c.bf16 %v1212_v48, %v1212_v48  ;;  %v1344_v36 = vadd.f32 %v1343_v30, %v1342_v41  ;;  %v1301_v50 = vrot.slane %v1300_v37, 1  ;;  %v1304_v18 = vadd.f32 %v1303_v21, %v1166_v61  ;;  %v1088_v16 = vpop.permute.xlu0 %1087 }
 0x22b   : > { %v4510_v34 = vunpack.c.l.b16 %v1411_v28  ;;  %v4513_v55 = vsel %vm1521_vm9, %v1513_v33, %v1547_v22  ;;  %v1262_v60 = vadd.f32 %v1261_v10, %v1159_v44  ;;  %v1219_v20 = vrot.slane %v1152_v1, 4 }
 0x22c   : > { %v4515_v25 = vunpack.c.l.b16 %v1426_v11  ;;  %v4517_v14 = vunpack.c.l.b16 %v1419_v58  ;;  %v1258_v56 = vadd.f32 %v1257_v52, %v1256_v53  ;;  %v1216_v17 = vadd.f32 %v1215_v63, %v1214_v9 }
 0x22d   : > { %v1348_v32 = vadd.f32 %v1347_v4, %v1346_v35  ;;  %v1263_v51 = vrot.slane %v1262_v60, 2  ;;  %v1220_v12 = vadd.f32 %v1219_v20, %v1152_v1  ;;  %v1174_v41 = vmul.f32 %v4481_v8, %v1130_v7 }
 0x22e   : > { %v4520_v45 = vunpack.c.l.b16 %v1412_v6  ;;  %v1434_v61 = vpack.c.bf16 %v1344_v36, %v1344_v36  ;;  %v1302_v54 = vadd.f32 %v1301_v50, %v1300_v37  ;;  %v1305_v22 = vrot.slane %v1304_v18, 2  ;;  %v1137_v33 = vpop.permute.xlu1 %1136 }
 0x22f   : > { %v1264_v48 = vadd.f32 %v1263_v51, %v1262_v60  ;;  %v1221_v30 = vrot.slane %v1220_v12, 2  ;;  %v1351_v21 = vrot.slane %v1174_v41, 4  ;;  %v1167_v28 = vmul.f32 %v4423_v40, %v1081_v57 }
 0x230   : > { %v1259_v44 = vrot.slane %v1258_v56, 1  ;;  %v1217_v53 = vrot.slane %v1216_v17, 1  ;;  %v1160_v9 = vmul.f32 %v4465_v0, %v1032_v62  ;;  %v1168_v35 = vmul.f32 %v4437_v39, %v1088_v16 }
 0x231   : > { %v1349_v11 = vrot.slane %v1348_v32, 1  ;;  %v1222_v7 = vadd.f32 %v1221_v30, %v1220_v12  ;;  %v1352_v58 = vadd.f32 %v1351_v21, %v1174_v41  ;;  %v1309_v52 = vrot.slane %v1167_v28, 4 }
 0x232   : > { %v4525_v63 = vunpack.c.l.b16 %v1434_v61  ;;  %v1306_v37 = vadd.f32 %v1305_v22, %v1304_v18  ;;  %v1267_v4 = vrot.slane %v1160_v9, 4  ;;  %v1315_v10 = vrot.slane %v1168_v35, 4  ;;  %v1144_v41 = vpop.permute.xlu1 %1143 }
 0x233   : > { %v1265_v1 = vrot.slane %v1264_v48, 1  ;;  %v1223_v6 = vrot.slane %v1222_v7, 1  ;;  %v1353_v36 = vrot.slane %v1352_v58, 2  ;;  %v1310_v57 = vadd.f32 %v1309_v52, %v1167_v28 }
 0x234   : > { %v1427_v50 = vpack.c.bf16 %v1302_v54, %v1302_v54  ;;  %v1260_v60 = vadd.f32 %v1259_v44, %v1258_v56  ;;  %v1268_v20 = vadd.f32 %v1267_v4, %v1160_v9  ;;  %v1316_v51 = vadd.f32 %v1315_v10, %v1168_v35 }
 0x235   : > { %v1218_v62 = vadd.f32 %v1217_v53, %v1216_v17  ;;  %v1350_v16 = vadd.f32 %v1349_v11, %v1348_v32  ;;  %v1354_v0 = vadd.f32 %v1353_v36, %v1352_v58  ;;  %v1311_v12 = vrot.slane %v1310_v57, 2 }
 0x236   : > { %v1307_v61 = vrot.slane %v1306_v37, 1  ;;  %v1269_v30 = vrot.slane %v1268_v20, 2  ;;  %v1317_v18 = vrot.slane %v1316_v51, 2  ;;  %v1175_v22 = vmul.f32 %v4473_v27, %v1137_v33 }
 0x237   : > { %v1266_v21 = vadd.f32 %v1265_v1, %v1264_v48  ;;  %v1224_v3 = vadd.f32 %v1223_v6, %v1222_v7  ;;  %v1355_v39 = vrot.slane %v1354_v0, 1  ;;  %v1312_v54 = vadd.f32 %v1311_v12, %v1310_v57 }
 0x238   : > { %v1270_v56 = vadd.f32 %v1269_v30, %v1268_v20  ;;  %v1318_v28 = vadd.f32 %v1317_v18, %v1316_v51  ;;  %v1357_v44 = vrot.slane %v1175_v22, 4  ;;  %v1176_v17 = vmul.f32 %v4479_v59, %v1144_v41 }
 0x239   : > { %v1420_v32 = vpack.c.bf16 %v1260_v60, %v1260_v60  ;;  %v1413_v53 = vpack.c.bf16 %v1218_v62, %v1218_v62  ;;  %v1435_v9 = vpack.c.bf16 %v1350_v16, %v1350_v16  ;;  %v1313_v35 = vrot.slane %v1312_v54, 1 }
 0x23a   : > { %v1271_v11 = vrot.slane %v1270_v56, 1  ;;  %v1319_v58 = vrot.slane %v1318_v28, 1  ;;  %v1358_v52 = vadd.f32 %v1357_v44, %v1175_v22  ;;  %v1363_v4 = vrot.slane %v1176_v17, 4 }
 0x23b   : > { %v1308_v33 = vadd.f32 %v1307_v61, %v1306_v37  ;;  %v1421_v48 = vpack.c.bf16 %v1266_v21, %v1266_v21  ;;  %v1414_v7 = vpack.c.bf16 %v1224_v3, %v1224_v3  ;;  %v1356_v10 = vadd.f32 %v1355_v39, %v1354_v0 }
 0x23c   : > { %v1507_v1 = vunpack.c.l.b16 %v1427_v50  ;;  %v1272_v6 = vadd.f32 %v1271_v11, %v1270_v56  ;;  %v1359_v36 = vrot.slane %v1358_v52, 2  ;;  %v1364_v57 = vadd.f32 %v1363_v4, %v1176_v17  ;;  %v1375_v11 = vpop.permute.xlu0 %1374 }
 0x23d   : > { %v1500_v20 = vunpack.c.l.b16 %v1420_v32  ;;  %v1493_v51 = vunpack.c.l.b16 %v1413_v53  ;;  %v1314_v12 = vadd.f32 %v1313_v35, %v1312_v54  ;;  %v1320_v41 = vadd.f32 %v1319_v58, %v1318_v28 }
 0x23e   : > { %v1515_v60 = vunpack.c.l.b16 %v1435_v9  ;;  %v1422_v62 = vpack.c.bf16 %v1272_v6, %v1272_v6  ;;  %v1360_v16 = vadd.f32 %v1359_v36, %v1358_v52  ;;  %v1365_v30 = vrot.slane %v1364_v57, 2 }
 0x23f   : > { %v1428_v18 = vpack.c.bf16 %v1308_v33, %v1308_v33  ;;  %v1501_v59 = vunpack.c.l.b16 %v1421_v48  ;;  %v1494_v22 = vunpack.c.l.b16 %v1414_v7  ;;  %v1436_v44 = vpack.c.bf16 %v1356_v10, %v1356_v10 }
 0x240   : > { %v1502_v37 = vunpack.c.l.b16 %v1422_v62  ;;  %v1361_v61 = vrot.slane %v1360_v16, 1  ;;  %v1366_v3 = vadd.f32 %v1365_v30, %v1364_v57  ;;  %v1526_v0 = vsel %vm1525_vm11, %v4510_v34, %v4499_v46  ;;  %v3696_v62 = vld [vmem:[%s5082_s4 + $0x8] sm:$0xff]  }
 0x241   : > { %v1429_v39 = vpack.c.bf16 %v1314_v12, %v1314_v12  ;;  %v1430_v50 = vpack.c.bf16 %v1320_v41, %v1320_v41  ;;  %v1528_v21 = vsel %vm1527_vm12, %v4520_v45, %v1526_v0  ;;  %v1536_v54 = vsel %vm1525_vm11, %v4517_v14, %v4507_v13  ;;  %v3705_v0 = vld [vmem:[%s5085_s7 + $0x30] sm:$0xff]  }
 0x242   : > { %v1362_v28 = vadd.f32 %v1361_v61, %v1360_v16  ;;  %v1367_v17 = vrot.slane %v1366_v3, 1  ;;  %v1530_v32 = vsel %vm1529_vm13, %v1493_v51, %v1528_v21  ;;  %v1537_v53 = vsel %vm1527_vm12, %v1500_v20, %v1536_v54  ;;  %v3697_v16 = vld [vmem:[%s5082_s4 + $0x10] sm:$0xff]   ;;  %v3703_v61 = vld [vmem:[%s5085_s7 + $0x20] sm:$0xff]  }
 0x243   : > { %v1378_v56 = vpop.permute.xlu1 %1377  ;;  %v1508_v9 = vunpack.c.l.b16 %v1428_v18  ;;  %v1516_v35 = vunpack.c.l.b16 %v1436_v44  ;;  %v1532_v46 = vsel %vm1531_vm14, %v1494_v22, %v1530_v32  ;;  %v1538_v34 = vsel %vm1529_vm13, %v1501_v59, %v1537_v53  ;;  %v3698_v18 = vld [vmem:[%s5082_s4 + $0x18] sm:$0xff]   ;;  %v1381_v22 = vpop.permute.xlu0 %1380  ;;  %3589 = vmatprep.subr.bf16.mxu0 %v3703_v61 }
 0x244   : > { %v1437_v58 = vpack.c.bf16 %v1362_v28, %v1362_v28  ;;  %v1368_v45 = vadd.f32 %v1367_v17, %v1366_v3  ;;  %v1539_v52 = vsel %vm1531_vm14, %v1502_v37, %v1538_v34  ;;  %vm1386_vm15 = vcmp.eq.s32.totalorder %v1378_v56, %v4042_v42  ;;  %v3704_v3 = vld [vmem:[%s5085_s7 + $0x28] sm:$0xff]   ;;  %3590 = vmatpush3.bf16.msra.mxu0 %v3703_v61 }
 0x245   : > { %v1542_v13 = vsel %vm1523_vm10, %v4515_v25, %v4503_v31  ;;  %v1549_v14 = vsel %vm1523_vm10, %v4525_v63, %v4513_v55  ;;  %v1509_v4 = vunpack.c.l.b16 %v1429_v39  ;;  %v1554_v33 = vpack.c.b16 %v1539_v52, %v1532_v46  ;;  %3591 = vmatprep.subr.bf16.mxu0 %v3704_v3  ;;  %v3706_v39 = vld [vmem:[%s5085_s7 + $0x38] sm:$0xff]  }
 0x246   : > { %v1510_v48 = vunpack.c.l.b16 %v1430_v50  ;;  %v1517_v7 = vunpack.c.l.b16 %v1437_v58  ;;  %v1438_v10 = vpack.c.bf16 %v1368_v45, %v1368_v45  ;;  %vm1385_vm0 = vcmp.eq.s32.totalorder %v1375_v11, %v4042_v42 }
 0x247   : > { %v1543_v59 = vsel %vm1525_vm11, %v1507_v1, %v1542_v13  ;;  %v1550_v6 = vsel %vm1525_vm11, %v1515_v60, %v1549_v14  ;;  %3565 = vmatprep.mubr.bf16.mxu1 %v1554_v33  ;;  %v5182_v36 = vmov 0.0   ;;  %v1384_v30 = vpop.permute.xlu1 %1383  ;;  %v3885_v50 = vmov 1966171168  }
 0x248   : > { %v3414_v57 = vsel %vm1386_vm15, 1.0, %v5182_v36  ;;  %v1544_v31 = vsel %vm1527_vm12, %v1508_v9, %v1543_v59  ;;  %v1551_v25 = vsel %vm1527_vm12, %v1516_v35, %v1550_v6  ;;  %v1518_v20 = vunpack.c.l.b16 %v1438_v10  ;;  %3592 = vmatpush3.bf16.msra.mxu0 %v3704_v3 }
 0x249   : > { %v1545_v55 = vsel %vm1529_vm13, %v1509_v4, %v1544_v31  ;;  %v1552_v63 = vsel %vm1529_vm13, %v1517_v7, %v1551_v25  ;;  %v3413_v51 = vsel %vm1385_vm0, 1.0, %v5182_v36  ;;  %vm1388_vm1 = vcmp.eq.s32.totalorder %v1384_v30, %v4042_v42  ;;  %3593 = vmatprep.subr.bf16.mxu0 %v3705_v0 }
 0x24a   : > { %v1546_v12 = vsel %vm1531_vm14, %v1510_v48, %v1545_v55  ;;  %v1553_v1 = vsel %vm1531_vm14, %v1518_v20, %v1552_v63  ;;  %v1397_v41 = vpack.c.bf16 %v3414_v57, %v3413_v51  ;;  %vm1387_vm15 = vcmp.eq.s32.totalorder %v1381_v22, %v4042_v42 }
 0x24b   : > { %v1555_v60 = vpack.c.b16 %v1553_v1, %v1546_v12  ;;  %v3415_v44 = vsel %vm1387_vm15, 1.0, %v5182_v36  ;;  %v1744_v21 = vunpack.c.l.s4 %v3885_v50 }
 0x24c   : > { %3594 = vmatpush3.bf16.msra.mxu0 %v3705_v0 }
 0x24d   : > { %3566 = vmatmul.mubr.bf16.vlgmr.msra.gmra.mrb[16].mxu1 %v1555_v60  ;;  %3595 = vmatprep.subr.bf16.mxu0 %v3706_v39  ;;  %v1745_v32 = vunpack.c.0.s8 %v1744_v21  ;;  %v5184_v21 = vld [vmem:[#allocation19_spill] sm:$0xff] }
 0x24e   : > { %3570 = vmatpush3.bf16.msra.mxu1 %v4355_v2  ;;  %3577 = vmatprep.mubr.msk.bf16.mxu1 %vm626_vm4, %v1397_v41  ;;  %v3416_v2 = vsel %vm1388_vm1, 1.0, %v5182_v36 }
 0x24f   : > { %3571 = vmatprep.subr.bf16.mxu1 %v3696_v62  ;;  %v1398_v37 = vpack.c.bf16 %v3416_v2, %v3415_v44  ;;  %v4589_v53 = vsub.s32 %v1745_v32, %v4161_v19  ;;  %v5183_v44 = vld [vmem:[#allocation21_spill] sm:$0xff]  ;;  %v5185_v32 = vld [vmem:[#allocation22_spill] sm:$0xff] }
 0x250   : > { %3596 = vmatpush3.bf16.msra.mxu0 %v3706_v39 }
 0x252   : > { %3572 = vmatpush3.bf16.msra.mxu1 %v3696_v62 }
 0x253   : > { %3573 = vmatprep.subr.bf16.mxu1 %v3697_v16 }
 0x256   : > { %3574 = vmatpush3.bf16.msra.mxu1 %v3697_v16 }
 0x257   : > { %3575 = vmatprep.subr.bf16.mxu1 %v3698_v18 }
 0x25a   : > { %3576 = vmatpush3.bf16.msra.mxu1 %v3698_v18 }
 0x25d   : > { %3578 = vmatmul.mubr.msk.bf16.vlgmr.msra.gmra.mrb[16].mxu1 %vm626_vm4, %v1398_v37 }
 0x330   : > { %v3579_v54 = vpop.f32.mrb[16].mxu1 }
 0x331   : > { %3787 = vtanh.f32 %v3579_v54  ;;  %v1719_v56 = vpop.f32.mrb[17].mxu1 }
 0x332   : > { %3789 = vtanh.f32 %v1719_v56  ;;  %v3580_v28 = vpop.f32.mrb[18].mxu1 }
 0x333   : > { %3791 = vtanh.f32 %v3580_v28  ;;  %v1722_v17 = vpop.f32.mrb[19].mxu1 }
 0x334   : > { %3793 = vtanh.f32 %v1722_v17 }
 0x33b   : > { %v3788_v9 = vpop.eup %3787 }
 0x33c   : > { %v3790_v35 = vpop.eup %3789  ;;  %v1847_v11 = vrot.slane %v3788_v9, %v4589_v53  ;;  %v1840_v46 = vcombine.high %v3788_v9, %v3788_v9 }
 0x33d   : > { %v3792_v34 = vpop.eup %3791  ;;  %v1749_v58 = vrot.slane %v3790_v35, %v4589_v53  ;;  %v1742_v12 = vcombine.high %v3790_v35, %v3790_v35 }
 0x33e   : > { %v3794_v45 = vpop.eup %3793  ;;  %v2931_v52 = vpack.c.bf16 %v3792_v34, %v3788_v9  ;;  %v1863_v13 = vrot.slane %v1847_v11, %v4589_v53  ;;  %v1896_v14 = vrot.slane %v3792_v34, %v4589_v53  ;;  %v1855_v4 = vcombine.high %v1847_v11, %v1847_v11 }
 0x33f   : > { %v2930_v33 = vpack.c.bf16 %v3794_v45, %v3790_v35  ;;  %v1765_v48 = vrot.slane %v1749_v58, %v4589_v53  ;;  %v1798_v7 = vrot.slane %v3794_v45, %v4589_v53  ;;  %v1854_v10 = vrot.slane %v1840_v46, %v4589_v53 }
 0x340   : > { %v2005_v59 = vrot.slane %v1863_v13, %v4168_v23  ;;  %v1912_v6 = vrot.slane %v1896_v14, %v4589_v53  ;;  %v4601_v36 = vrot.slane %v1855_v4, %v4589_v53  ;;  %v1885_v57 = vcombine.high %v1863_v13, %v1863_v13 }
 0x341   : > { %3597 = vmatprep.mubr.bf16.mxu0 %v2930_v33  ;;  %v1941_v31 = vrot.slane %v1765_v48, %v4168_v23  ;;  %v4605_v25 = vrot.slane %v1798_v7, %v4589_v53  ;;  %v4608_v20 = vrot.slane %v1854_v10, %v4589_v53  ;;  %v1904_v55 = vcombine.high %v1896_v14, %v1896_v14 }
 0x342   : > { %3598 = vmatmul.mubr.bf16.vlgmr.msra.gmra.mrb[16].mxu0 %v2931_v52  ;;  %v2114_v63 = vmul.f32 %v4395_v47, %v2005_v59  ;;  %v2037_v51 = vrot.slane %v1912_v6, %v4168_v23  ;;  %v2009_v41 = vrot.slane %v4601_v36, %v4168_v23  ;;  %v1757_v62 = vcombine.high %v1749_v58, %v1749_v58  ;;  %v5186_v52 = vld [vmem:[#allocation32_spill] sm:$0xff] }
 0x343   : > { %v2098_v1 = vmul.f32 %v4383_v26, %v1941_v31  ;;  %v4616_v60 = vrot.slane %v1904_v55, %v4589_v53  ;;  %v2013_v16 = vrot.slane %v1885_v57, %v4168_v23  ;;  %v1889_v22 = vcombine.high %v3792_v34, %v3792_v34  ;;  %v5187_v57 = vld [vmem:[#allocation18_spill] sm:$0xff] }
 0x344   : > { %2162 = vadd.xlane.f32.xlu1 %v2114_v63  ;;  %v2122_v30 = vmul.f32 %v4434_v29, %v2037_v51  ;;  %v4621_v18 = vrot.slane %v1757_v62, %v4589_v53  ;;  %v1756_v2 = vrot.slane %v1742_v12, %v4589_v53  ;;  %v2115_v37 = vmul.f32 %v5183_v44, %v2009_v41  ;;  %v5188_v51 = vld [vmem:[#allocation31_spill] sm:$0xff]  ;;  %v5189_v41 = vld [vmem:[#allocation16_spill] sm:$0xff] }
 0x345   : > { %2130 = vadd.xlane.f32.xlu0 %v2098_v1  ;;  %v1973_v61 = vrot.slane %v4605_v25, %v4168_v23  ;;  %v1806_v3 = vcombine.high %v1798_v7, %v1798_v7  ;;  %v1903_v0 = vrot.slane %v1889_v22, %v4589_v53  ;;  %v2116_v54 = vmul.f32 %v5184_v21, %v2013_v16 }
 0x346   : > { %v4629_v39 = vrot.slane %v1756_v2, %v4589_v53  ;;  %v2021_v56 = vrot.slane %v4608_v20, %v4168_v23  ;;  %v2041_v28 = vrot.slane %v4616_v60, %v4168_v23  ;;  %v1934_v35 = vcombine.high %v1912_v6, %v1912_v6 }
 0x347   : > { %v4632_v50 = vrot.slane %v1806_v3, %v4589_v53  ;;  %v4640_v17 = vrot.slane %v1903_v0, %v4589_v53  ;;  %v2106_v9 = vmul.f32 %v5185_v32, %v1973_v61  ;;  %v1758_v11 = vcombine.high %v1756_v2, %v1756_v2  ;;  %v5190_v3 = vld [vmem:[#allocation24_spill] sm:$0xff] }
 0x348   : > { %2178 = vadd.xlane.f32.xlu1 %v2122_v30  ;;  %v1856_v46 = vcombine.high %v1854_v10, %v1854_v10  ;;  %v1791_v34 = vcombine.high %v3794_v45, %v3794_v45  ;;  %v2118_v58 = vmul.f32 %v4428_v49, %v2021_v56  ;;  %v2123_v13 = vmul.f32 %v5186_v52, %v2041_v28  ;;  %v5191_v56 = vld [vmem:[#allocation26_spill] sm:$0xff] }
 0x349   : > { %2164 = vadd.xlane.f32.xlu0 %v2115_v37  ;;  %v1945_v14 = vrot.slane %v4621_v18, %v4168_v23  ;;  %v1787_v4 = vcombine.high %v1765_v48, %v1765_v48  ;;  %v2045_v33 = vrot.slane %v1934_v35, %v4168_v23  ;;  %v1905_v6 = vcombine.high %v1903_v0, %v1903_v0 }
 0x34a   : > { %v4649_v7 = vrot.slane %v1856_v46, %v4589_v53  ;;  %v1805_v59 = vrot.slane %v1791_v34, %v4589_v53  ;;  %v4653_v10 = vrot.slane %v1758_v11, %v4589_v53  ;;  %v2053_v1 = vrot.slane %v4640_v17, %v4168_v23  ;;  %v5193_v11 = vld [vmem:[#allocation28_spill] sm:$0xff] }
 0x34b   : > { %v2099_v31 = vmul.f32 %v5187_v57, %v1945_v14  ;;  %v1949_v48 = vrot.slane %v1787_v4, %v4168_v23  ;;  %v4661_v63 = vrot.slane %v1905_v6, %v4589_v53  ;;  %v2124_v12 = vmul.f32 %v5188_v51, %v2045_v33 }
 0x34c   : > { %2166 = vadd.xlane.f32.xlu1 %v2116_v54  ;;  %v4656_v45 = vrot.slane %v1805_v59, %v4589_v53  ;;  %v1807_v55 = vcombine.high %v1805_v59, %v1805_v59  ;;  %v1957_v16 = vrot.slane %v4629_v39, %v4168_v23  ;;  %v1887_v30 = vcombine.high %v4601_v36, %v4601_v36 }
 0x34d   : > { %2146 = vadd.xlane.f32.xlu0 %v2106_v9  ;;  %v2100_v62 = vmul.f32 %v5189_v41, %v1949_v48  ;;  %v2126_v2 = vmul.f32 %v4475_v24, %v2053_v1  ;;  %v1977_v37 = vrot.slane %v4632_v50, %v4168_v23  ;;  %v1836_v61 = vcombine.high %v4605_v25, %v4605_v25 }
 0x34e   : > { %v4672_v22 = vrot.slane %v1807_v55, %v4589_v53  ;;  %v2102_v0 = vmul.f32 %v5190_v3, %v1957_v16  ;;  %v2017_v54 = vrot.slane %v1887_v30, %v4168_v23  ;;  %v5192_v53 = vld [vmem:[#allocation20_spill] sm:$0xff]  ;;  %v2025_v35 = vrot.slane %v4649_v7, %v4168_v23  ;;  %v5194_v55 = vld [vmem:[#allocation17_spill] sm:$0xff] }
 0x34f   : > { %v2107_v28 = vmul.f32 %v5191_v56, %v1977_v37  ;;  %v1981_v36 = vrot.slane %v1836_v61, %v4168_v23  ;;  %v1886_v25 = vcombine.high %v4608_v20, %v4608_v20  ;;  %v1989_v34 = vrot.slane %v4656_v45, %v4168_v23  ;;  %v5195_v30 = vld [vmem:[#allocation25_spill] sm:$0xff] }
 0x350   : > { %2170 = vadd.xlane.f32.xlu1 %v2118_v58  ;;  %v2117_v9 = vmul.f32 %v5192_v53, %v2017_v54  ;;  %v1936_v58 = vcombine.high %v4616_v60, %v4616_v60  ;;  %v1789_v4 = vcombine.high %v4621_v18, %v4621_v18  ;;  %v1935_v60 = vcombine.high %v4640_v17, %v4640_v17  ;;  %v5196_v54 = vld [vmem:[#allocation23_spill] sm:$0xff] }
 0x351   : > { %2180 = vadd.xlane.f32.xlu0 %v2123_v13  ;;  %v2108_v46 = vmul.f32 %v5193_v11, %v1981_v36  ;;  %v2119_v13 = vmul.f32 %v4442_v43, %v2025_v35  ;;  %v2029_v14 = vrot.slane %v1886_v25, %v4168_v23  ;;  %v2110_v33 = vmul.f32 %v4461_v5, %v1989_v34  ;;  %v5197_v35 = vld [vmem:[#allocation30_spill] sm:$0xff] }
 0x352   : > { %v2049_v20 = vrot.slane %v1936_v58, %v4168_v23  ;;  %v1953_v6 = vrot.slane %v1789_v4, %v4168_v23  ;;  %v2057_v48 = vrot.slane %v4661_v63, %v4168_v23  ;;  %v1788_v18 = vcombine.high %v4629_v39, %v4629_v39  ;;  %v5198_v58 = vld [vmem:[#allocation35_spill] sm:$0xff] }
 0x353   : > { %v2120_v59 = vmul.f32 %v4423_v40, %v2029_v14  ;;  %v1961_v1 = vrot.slane %v4653_v10, %v4168_v23  ;;  %v2061_v16 = vrot.slane %v1935_v60, %v4168_v23  ;;  %v1790_v39 = vcombine.high %v4653_v10, %v4653_v10  ;;  %v5201_v60 = vld [vmem:[#allocation34_spill] sm:$0xff] }
 0x354   : > { %2132 = vadd.xlane.f32.xlu1 %v2099_v31  ;;  %v2125_v31 = vmul.f32 %v4451_v38, %v2049_v20  ;;  %v2127_v17 = vmul.f32 %v4481_v8, %v2057_v48  ;;  %v1965_v37 = vrot.slane %v1788_v18, %v4168_v23  ;;  %v1993_v10 = vrot.slane %v4672_v22, %v4168_v23  ;;  %v5200_v20 = vld [vmem:[#allocation33_spill] sm:$0xff]  ;;  %v5202_v18 = vld [vmem:[#allocation36_spill] sm:$0xff] }
 0x355   : > { %2182 = vadd.xlane.f32.xlu0 %v2124_v12  ;;  %v2101_v12 = vmul.f32 %v5194_v55, %v1953_v6  ;;  %v2128_v61 = vmul.f32 %v4473_v27, %v2061_v16  ;;  %v1969_v36 = vrot.slane %v1790_v39, %v4168_v23  ;;  %v1839_v14 = vcombine.high %v4672_v22, %v4672_v22 }
 0x357   : > { %v2001_v6 = vrot.slane %v1839_v14, %v4168_v23  ;;  %v4758_v14 = vsub.s32 %v4042_v42, %v4161_v19 }
 0x358   : > { %2134 = vadd.xlane.f32.xlu1 %v2100_v62  ;;  %v1838_v62 = vcombine.high %v4632_v50, %v4632_v50  ;;  %v1888_v50 = vcombine.high %v4649_v7, %v4649_v7  ;;  %v2111_v7 = vmul.f32 %v5198_v58, %v1993_v10 }
 0x359   : > { %2186 = vadd.xlane.f32.xlu0 %v2126_v2  ;;  %v2103_v2 = vmul.f32 %v5195_v30, %v1961_v1 }
 0x35a   : > { %v2033_v34 = vrot.slane %v1888_v50, %v4168_v23 }
 0x35c   : > { %2138 = vadd.xlane.f32.xlu1 %v2102_v0  ;;  %v1985_v0 = vrot.slane %v1838_v62, %v4168_v23 }
 0x35d   : > { %2148 = vadd.xlane.f32.xlu0 %v2107_v28  ;;  %v2104_v28 = vmul.f32 %v5196_v54, %v1965_v37 }
 0x35e   : > { %v2109_v25 = vmul.f32 %v5197_v35, %v1985_v0 }
 0x360   : > { %2168 = vadd.xlane.f32.xlu1 %v2117_v9  ;;  %v1837_v9 = vcombine.high %v4656_v45, %v4656_v45  ;;  %v5199_v45 = vld [vmem:[#allocation29_spill] sm:$0xff] }
 0x361   : > { %2150 = vadd.xlane.f32.xlu0 %v2108_v46  ;;  %v2105_v46 = vmul.f32 %v4416_v15, %v1969_v36  ;;  %v2121_v4 = vmul.f32 %v5199_v45, %v2033_v34 }
 0x364   : > { %2172 = vadd.xlane.f32.xlu1 %v2119_v13  ;;  %v1997_v13 = vrot.slane %v1837_v9, %v4168_v23 }
 0x365   : > { %2154 = vadd.xlane.f32.xlu0 %v2110_v33  ;;  %v1937_v33 = vcombine.high %v4661_v63, %v4661_v63 }
 0x367   : > { %v2065_v48 = vrot.slane %v1937_v33, %v4168_v23 }
 0x368   : > { %2174 = vadd.xlane.f32.xlu1 %v2120_v59  ;;  %v2112_v59 = vmul.f32 %v5200_v20, %v1997_v13 }
 0x369   : > { %2184 = vadd.xlane.f32.xlu0 %v2125_v31  ;;  %v2113_v31 = vmul.f32 %v5201_v60, %v2001_v6  ;;  %v2129_v22 = vmul.f32 %v5202_v18, %v2065_v48 }
 0x36c   : > { %2136 = vadd.xlane.f32.xlu1 %v2101_v12 }
 0x36d   : > { %2188 = vadd.xlane.f32.xlu0 %v2127_v17 }
 0x370   : > { %2140 = vadd.xlane.f32.xlu1 %v2103_v2 }
 0x371   : > { %2190 = vadd.xlane.f32.xlu0 %v2128_v61 }
 0x374   : > { %2142 = vadd.xlane.f32.xlu1 %v2104_v28 }
 0x375   : > { %2152 = vadd.xlane.f32.xlu0 %v2109_v25 }
 0x378   : > { %2144 = vadd.xlane.f32.xlu1 %v2105_v46 }
 0x379   : > { %2156 = vadd.xlane.f32.xlu0 %v2111_v7 }
 0x37c   : > { %2176 = vadd.xlane.f32.xlu1 %v2121_v4 }
 0x37d   : > { %2158 = vadd.xlane.f32.xlu0 %v2112_v59 }
 0x381   : > { %2160 = vadd.xlane.f32.xlu0 %v2113_v31 }
 0x385   : > { %2192 = vadd.xlane.f32.xlu0 %v2129_v22 }
 0x3d1   : > { %v2163_v12 = vpop.xlane.xlu1 %2162 }
 0x3d2   : > { %v2131_v1 = vpop.xlane.xlu0 %2130 }
 0x3d3   : > { %v2229_v31 = vrot.slane %v2131_v1, %v4758_v14 }
 0x3d5   : > { %v4744_v62 = vpop.xlane.xlu1 %2178 }
 0x3d6   : > { %v2165_v17 = vpop.xlane.xlu0 %2164 }
 0x3d7   : > { %v2297_v18 = vrot.slane %v2165_v17, %v4758_v14 }
 0x3d9   : > { %v2167_v63 = vpop.xlane.xlu1 %2166 }
 0x3da   : > { %v2147_v16 = vpop.xlane.xlu0 %2146  ;;  %v2301_v19 = vrot.slane %v2167_v63, %v4758_v14 }
 0x3db   : > { %v2261_v63 = vrot.slane %v2147_v16, %v4758_v14 }
 0x3dd   : > { %v2171_v2 = vpop.xlane.xlu1 %2170 }
 0x3de   : > { %v4746_v37 = vpop.xlane.xlu0 %2180  ;;  %v2309_v16 = vrot.slane %v2171_v2, %v4758_v14 }
 0x3e1   : > { %v2133_v39 = vpop.xlane.xlu1 %2132 }
 0x3e2   : > { %v4748_v61 = vpop.xlane.xlu0 %2182  ;;  %v2233_v33 = vrot.slane %v2133_v39, %v4758_v14  ;;  %v2293_v39 = vrot.slane %v2163_v12, %v4758_v14 }
 0x3e4   : > { %v2354_v60 = vsel %vm1519_vm8, %v2233_v33, %v2229_v31  ;;  %v2368_v33 = vsel %vm1519_vm8, %v2297_v18, %v2293_v39 }
 0x3e5   : > { %v2135_v0 = vpop.xlane.xlu1 %2134 }
 0x3e6   : > { %v4750_v50 = vpop.xlane.xlu0 %2186  ;;  %v2237_v59 = vrot.slane %v2135_v0, %v4758_v14 }
 0x3e8   : > { %v2355_v20 = vsel %vm1521_vm9, %v2237_v59, %v2354_v60  ;;  %v2369_v60 = vsel %vm1521_vm9, %v2301_v19, %v2368_v33  ;;  %v2333_v19 = vrot.slane %v4748_v61, %v4758_v14 }
 0x3e9   : > { %v2139_v28 = vpop.xlane.xlu1 %2138 }
 0x3ea   : > { %v2149_v36 = vpop.xlane.xlu0 %2148  ;;  %v2245_v40 = vrot.slane %v2139_v28, %v4758_v14 }
 0x3eb   : > { %v2265_v59 = vrot.slane %v2149_v36, %v4758_v14 }
 0x3ed   : > { %v2169_v9 = vpop.xlane.xlu1 %2168  ;;  %v2361_v39 = vsel %vm1519_vm8, %v2265_v59, %v2261_v63 }
 0x3ee   : > { %v2151_v25 = vpop.xlane.xlu0 %2150  ;;  %v2305_v0 = vrot.slane %v2169_v9, %v4758_v14 }
 0x3ef   : > { %v2269_v12 = vrot.slane %v2151_v25, %v4758_v14 }
 0x3f1   : > { %v2173_v10 = vpop.xlane.xlu1 %2172 }
 0x3f2   : > { %v4752_v46 = vpop.xlane.xlu0 %2154  ;;  %v2313_v31 = vrot.slane %v2173_v10, %v4758_v14 }
 0x3f5   : > { %v2175_v34 = vpop.xlane.xlu1 %2174 }
 0x3f6   : > { %v4754_v7 = vpop.xlane.xlu0 %2184 }
 0x3f7   : > { %v2337_v63 = vrot.slane %v4754_v7, %v4758_v14 }
 0x3f9   : > { %v2137_v13 = vpop.xlane.xlu1 %2136 }
 0x3fa   : > { %v4760_v4 = vpop.xlane.xlu0 %2188  ;;  %v2241_v48 = vrot.slane %v2137_v13, %v4758_v14 }
 0x3fc   : > { %v2356_v58 = vsel %vm1523_vm10, %v2241_v48, %v2355_v20  ;;  %v2317_v48 = vrot.slane %v2175_v34, %v4758_v14 }
 0x3fd   : > { %v2141_v6 = vpop.xlane.xlu1 %2140  ;;  %v2357_v9 = vsel %vm1525_vm11, %v2245_v40, %v2356_v58  ;;  %v2325_v40 = vrot.slane %v4744_v62, %v4758_v14  ;;  %v2329_v58 = vrot.slane %v4746_v37, %v4758_v14 }
 0x3fe   : > { %v4766_v22 = vpop.xlane.xlu0 %2190  ;;  %v2249_v1 = vrot.slane %v2141_v6, %v4758_v14  ;;  %v2370_v6 = vsel %vm1523_vm10, %v2305_v0, %v2369_v60 }
 0x3ff   : > { %v2371_v2 = vsel %vm1525_vm11, %v2309_v16, %v2370_v6  ;;  %v2375_v6 = vsel %vm1519_vm8, %v2329_v58, %v2325_v40  ;;  %v2341_v40 = vrot.slane %v4750_v50, %v4758_v14  ;;  %v2349_v58 = vrot.slane %v4766_v22, %v4758_v14 }
 0x400   : > { %v2358_v28 = vsel %vm1527_vm12, %v2249_v1, %v2357_v9  ;;  %v2372_v62 = vsel %vm1527_vm12, %v2313_v31, %v2371_v2  ;;  %v2376_v7 = vsel %vm1521_vm9, %v2333_v19, %v2375_v6 }
 0x401   : > { %v2143_v45 = vpop.xlane.xlu1 %2142  ;;  %v2373_v61 = vsel %vm1529_vm13, %v2317_v48, %v2372_v62  ;;  %v2377_v48 = vsel %vm1523_vm10, %v2337_v63, %v2376_v7 }
 0x402   : > { %v2153_v13 = vpop.xlane.xlu0 %2152  ;;  %v2253_v17 = vrot.slane %v2143_v45, %v4758_v14 }
 0x403   : > { %v2273_v25 = vrot.slane %v2153_v13, %v4758_v14  ;;  %v2362_v13 = vsel %vm1521_vm9, %v2269_v12, %v2361_v39  ;;  %v2277_v12 = vrot.slane %v4752_v46, %v4758_v14  ;;  %v2345_v46 = vrot.slane %v4760_v4, %v4758_v14 }
 0x404   : > { %v2359_v36 = vsel %vm1529_vm13, %v2253_v17, %v2358_v28  ;;  %v2378_v39 = vsel %vm1525_vm11, %v2341_v40, %v2377_v48 }
 0x405   : > { %v2145_v20 = vpop.xlane.xlu1 %2144  ;;  %v2363_v60 = vsel %vm1523_vm10, %v2273_v25, %v2362_v13  ;;  %v2379_v0 = vsel %vm1527_vm12, %v2345_v46, %v2378_v39 }
 0x406   : > { %v2257_v45 = vrot.slane %v2145_v20, %v4758_v14  ;;  %v2157_v18 = vpop.xlane.xlu0 %2156  ;;  %v2380_v62 = vsel %vm1529_vm13, %v2349_v58, %v2379_v0 }
 0x407   : > { %v2281_v59 = vrot.slane %v2157_v18, %v4758_v14 }
 0x408   : > { %v2360_v10 = vsel %vm1531_vm14, %v2257_v45, %v2359_v36  ;;  %v2364_v45 = vsel %vm1525_vm11, %v2277_v12, %v2363_v60 }
 0x409   : > { %v2177_v34 = vpop.xlane.xlu1 %2176  ;;  %v2386_v1 = vsel %vm884_vm5, %v2360_v10, -1e+30  ;;  %v2365_v36 = vsel %vm1527_vm12, %v2281_v59, %v2364_v45 }
 0x40a   : > { %v2321_v37 = vrot.slane %v2177_v34, %v4758_v14  ;;  %v2159_v17 = vpop.xlane.xlu0 %2158  ;;  %v2390_v33 = vsel %vm896_vm2, %v2386_v1, -inf }
 0x40b   : > { %2391 = vmax.xlane.f32.xlu1 %v2390_v33  ;;  %v2285_v9 = vrot.slane %v2159_v17, %v4758_v14 }
 0x40c   : > { %v2374_v20 = vsel %vm1531_vm14, %v2321_v37, %v2373_v61 }
 0x40d   : > { %v2388_v28 = vsel %vm886_vm7, %v2374_v20, -1e+30  ;;  %v2366_v10 = vsel %vm1529_vm13, %v2285_v9, %v2365_v36 }
 0x40e   : > { %v2161_v16 = vpop.xlane.xlu0 %2160  ;;  %v2396_v18 = vsel %vm896_vm2, %v2388_v28, -inf }
 0x40f   : > { %v2289_v25 = vrot.slane %v2161_v16, %v4758_v14  ;;  %2397 = vmax.xlane.f32.xlu1 %v2396_v18 }
 0x411   : > { %v2367_v19 = vsel %vm1531_vm14, %v2289_v25, %v2366_v10 }
 0x412   : > { %v2193_v2 = vpop.xlane.xlu0 %2192  ;;  %v2387_v34 = vsel %vm885_vm3, %v2367_v19, -1e+30 }
 0x413   : > { %v2353_v13 = vrot.slane %v2193_v2, %v4758_v14  ;;  %v2393_v50 = vsel %vm896_vm2, %v2387_v34, -inf  ;;  %v5207_v2 = vld [vmem:[#allocation9_spill] sm:$0xff] }
 0x414   : > { %2394 = vmax.xlane.f32.xlu0 %v2393_v50 }
 0x415   : > { %v2381_v22 = vsel %vm1531_vm14, %v2353_v13, %v2380_v62  ;;  %v5208_v62 = vld [vmem:[#allocation10_spill] sm:$0xff] }
 0x416   : > { %v2389_v17 = vsel %vm887_vm6, %v2381_v22, -1e+30 }
 0x417   : > { %v2399_v33 = vsel %vm896_vm2, %v2389_v17, -inf }
 0x418   : > { %2400 = vmax.xlane.f32.xlu0 %v2399_v33  ;;  %v5209_v33 = vld [vmem:[#allocation11_spill] sm:$0xff] }
 0x498   : > { %v2392_v61 = vpop.xlane.xlu1 %2391 }
 0x499   : > { %v2402_v63 = vsub.f32 %v2386_v1, %v2392_v61 }
 0x49b   : > { %v2406_v12 = vmul.f32 1.442695, %v2402_v63 }
 0x49c   : > { %v2398_v60 = vpop.xlane.xlu1 %2397 }
 0x49d   : > { %v2404_v59 = vsub.f32 %v2388_v28, %v2398_v60  ;;  %v5210_v60 = vld [vmem:[#allocation12_spill] sm:$0xff] }
 0x49f   : > { %v2410_v14 = vmul.f32 1.442695, %v2404_v59 }
 0x4a1   : > { %3795 = vpow2.f32 %v2410_v14  ;;  %v2395_v9 = vpop.xlane.xlu0 %2394  ;;  %v5211_v14 = vld [vmem:[#allocation13_spill] sm:$0xff] }
 0x4a2   : > { %v2403_v20 = vsub.f32 %v2387_v34, %v2395_v9  ;;  %3797 = vpow2.f32 %v2406_v12 }
 0x4a4   : > { %v2408_v6 = vmul.f32 1.442695, %v2403_v20 }
 0x4a5   : > { %v2401_v31 = vpop.xlane.xlu0 %2400 }
 0x4a6   : > { %3799 = vpow2.f32 %v2408_v6  ;;  %v2405_v7 = vsub.f32 %v2389_v17, %v2401_v31 }
 0x4a8   : > { %v2412_v45 = vmul.f32 1.442695, %v2405_v7 }
 0x4aa   : > { %3801 = vpow2.f32 %v2412_v45 }
 0x4ab   : > { %v3796_v42 = vpop.eup %3795 }
 0x4ac   : > { %v2420_v16 = vsel %vm896_vm2, %v3796_v42, 0.0  ;;  %v3798_v18 = vpop.eup %3797 }
 0x4ad   : > { %2421 = vadd.xlane.f32.xlu1 %v2420_v16  ;;  %v2414_v28 = vsel %vm896_vm2, %v3798_v18, 0.0 }
 0x4b0   : > { %v3800_v1 = vpop.eup %3799 }
 0x4b1   : > { %2415 = vadd.xlane.f32.xlu1 %v2414_v28  ;;  %v2417_v48 = vsel %vm896_vm2, %v3800_v1, 0.0  ;;  %v5212_v28 = vld [vmem:[#allocation14_spill] sm:$0xff] }
 0x4b2   : > { %2418 = vadd.xlane.f32.xlu0 %v2417_v48 }
 0x4b4   : > { %v3802_v46 = vpop.eup %3801 }
 0x4b5   : > { %v2423_v36 = vsel %vm896_vm2, %v3802_v46, 0.0 }
 0x4b6   : > { %2424 = vadd.xlane.f32.xlu0 %v2423_v36 }
 0x53a   : > { %v2422_v25 = vpop.xlane.xlu1 %2421 }
 0x53b   : > { %3803 = vrcp.f32 %v2422_v25 }
 0x53e   : > { %v2416_v40 = vpop.xlane.xlu1 %2415 }
 0x53f   : > { %3805 = vrcp.f32 %v2416_v40  ;;  %v2419_v58 = vpop.xlane.xlu0 %2418 }
 0x543   : > { %v2425_v10 = vpop.xlane.xlu0 %2424 }
 0x544   : > { %3807 = vrcp.f32 %v2425_v10  ;;  %v5213_v10 = vld [vmem:[#allocation15_spill] sm:$0xff] }
 0x545   : > { %v3804_v19 = vpop.eup %3803  ;;  %3809 = vrcp.f32 %v2419_v58 }
 0x546   : > { %v4852_v39 = vmul.f32 %v3804_v19, %v3796_v42 }
 0x548   : > { %v2556_v4 = vrot.slane %v4852_v39, %v5207_v2  ;;  %v2549_v34 = vrot.slane %v4852_v39, %v4168_v23  ;;  %v2563_v22 = vrot.slane %v4852_v39, %v5208_v62  ;;  %v2570_v61 = vrot.slane %v4852_v39, %v5209_v33 }
 0x549   : > { %v3806_v0 = vpop.eup %3805  ;;  %v2577_v59 = vrot.slane %v4852_v39, %v5210_v60  ;;  %v2584_v9 = vrot.slane %v4852_v39, %v5211_v14 }
 0x54a   : > { %v2427_v13 = vmul.f32 %v3806_v0, %v3798_v18  ;;  %2558 = vbcast.lane.b32.xlu1 %v2556_v4, 256  ;;  %2551 = vbcast.lane.b32.xlu0 %v2549_v34, 256 }
 0x54c   : > { %v2437_v50 = vrot.slane %v2427_v13, %v4168_v23  ;;  %v2444_v6 = vrot.slane %v2427_v13, %v5207_v2  ;;  %v2451_v7 = vrot.slane %v2427_v13, %v5208_v62  ;;  %v2458_v16 = vrot.slane %v2427_v13, %v5209_v33 }
 0x54d   : > { %v2472_v25 = vrot.slane %v2427_v13, %v5211_v14  ;;  %v2479_v58 = vrot.slane %v2427_v13, %v5212_v28  ;;  %v2486_v19 = vrot.slane %v2427_v13, %v5213_v10 }
 0x54e   : > { %v3808_v37 = vpop.eup %3807  ;;  %2439 = vbcast.lane.b32.xlu1 %v2437_v50, 256  ;;  %2565 = vbcast.lane.b32.xlu0 %v2563_v22, 256 }
 0x54f   : > { %v2433_v17 = vmul.f32 %v3808_v37, %v3802_v46  ;;  %v3810_v42 = vpop.eup %3809  ;;  %v2465_v46 = vrot.slane %v2427_v13, %v5210_v60  ;;  %v2598_v13 = vrot.slane %v4852_v39, %v5213_v10  ;;  %v3707_v37 = vld [vmem:[%s5084_s6] sm:$0xff]  }
 0x550   : > { %v2429_v18 = vmul.f32 %v3810_v42, %v3800_v1  ;;  %3601 = vmatprep.subr.bf16.mxu0 %v3707_v37 }
 0x551   : > { %v2612_v63 = vrot.slane %v2433_v17, %v5207_v2  ;;  %v2619_v12 = vrot.slane %v2433_v17, %v5208_v62  ;;  %v2626_v20 = vrot.slane %v2433_v17, %v5209_v33  ;;  %v2633_v31 = vrot.slane %v2433_v17, %v5210_v60  ;;  %3602 = vmatpush3.bf16.msra.mxu0 %v3707_v37 }
 0x552   : > { %2572 = vbcast.lane.b32.xlu0 %v2570_v61, 256  ;;  %v2640_v45 = vrot.slane %v2433_v17, %v5211_v14  ;;  %v2647_v48 = vrot.slane %v2433_v17, %v5212_v28  ;;  %v2493_v36 = vrot.slane %v2429_v18, %v4168_v23  ;;  %v2500_v40 = vrot.slane %v2429_v18, %v5207_v2  ;;  %v3711_v61 = vld [vmem:[%s5084_s6 + $0x20] sm:$0xff]  }
 0x553   : > { %2614 = vbcast.lane.b32.xlu1 %v2612_v63, 256  ;;  %v2507_v1 = vrot.slane %v2429_v18, %v5208_v62  ;;  %v2514_v4 = vrot.slane %v2429_v18, %v5209_v33  ;;  %v2605_v34 = vrot.slane %v2433_v17, %v4168_v23  ;;  %v2521_v0 = vrot.slane %v2429_v18, %v5210_v60  ;;  %v3709_v33 = vld [vmem:[%s5084_s6 + $0x10] sm:$0xff]   ;;  %v3712_v63 = vld [vmem:[%s5084_s6 + $0x28] sm:$0xff]  }
 0x554   : > { %v2591_v2 = vrot.slane %v4852_v39, %v5212_v28  ;;  %v2528_v50 = vrot.slane %v2429_v18, %v5211_v14  ;;  %v2535_v62 = vrot.slane %v2429_v18, %v5212_v28  ;;  %v2542_v23 = vrot.slane %v2429_v18, %v5213_v10  ;;  %v3708_v39 = vld [vmem:[%s5084_s6 + $0x8] sm:$0xff]   ;;  %v3713_v60 = vld [vmem:[%s5084_s6 + $0x30] sm:$0xff]  }
 0x555   : > { %v2654_v22 = vrot.slane %v2433_v17, %v5213_v10  ;;  %3603 = vmatprep.subr.bf16.mxu0 %v3708_v39  ;;  %v3710_v17 = vld [vmem:[%s5084_s6 + $0x18] sm:$0xff]  }
 0x556   : > { %2579 = vbcast.lane.b32.xlu0 %v2577_v59, 256  ;;  %3604 = vmatpush3.bf16.msra.mxu0 %v3708_v39  ;;  %v3714_v59 = vld [vmem:[%s5084_s6 + $0x38] sm:$0xff]  }
 0x557   : > { %2621 = vbcast.lane.b32.xlu1 %v2619_v12, 256  ;;  %3605 = vmatprep.subr.bf16.mxu0 %v3709_v33 }
 0x55a   : > { %2586 = vbcast.lane.b32.xlu0 %v2584_v9, 256  ;;  %3606 = vmatpush3.bf16.msra.mxu0 %v3709_v33 }
 0x55b   : > { %2628 = vbcast.lane.b32.xlu1 %v2626_v20, 256  ;;  %3607 = vmatprep.subr.bf16.mxu0 %v3710_v17 }
 0x55e   : > { %2446 = vbcast.lane.b32.xlu0 %v2444_v6, 256  ;;  %3608 = vmatpush3.bf16.msra.mxu0 %v3710_v17 }
 0x55f   : > { %2635 = vbcast.lane.b32.xlu1 %v2633_v31, 256  ;;  %3609 = vmatprep.subr.bf16.mxu0 %v3711_v61 }
 0x562   : > { %2453 = vbcast.lane.b32.xlu0 %v2451_v7, 256  ;;  %3610 = vmatpush3.bf16.msra.mxu0 %v3711_v61 }
 0x563   : > { %2642 = vbcast.lane.b32.xlu1 %v2640_v45, 256  ;;  %3611 = vmatprep.subr.bf16.mxu0 %v3712_v63 }
 0x566   : > { %2460 = vbcast.lane.b32.xlu0 %v2458_v16, 256  ;;  %3612 = vmatpush3.bf16.msra.mxu0 %v3712_v63 }
 0x567   : > { %2649 = vbcast.lane.b32.xlu1 %v2647_v48, 256  ;;  %3613 = vmatprep.subr.bf16.mxu0 %v3713_v60 }
 0x56a   : > { %2467 = vbcast.lane.b32.xlu0 %v2465_v46, 256  ;;  %3614 = vmatpush3.bf16.msra.mxu0 %v3713_v60 }
 0x56b   : > { %2495 = vbcast.lane.b32.xlu1 %v2493_v36, 256  ;;  %3615 = vmatprep.subr.bf16.mxu0 %v3714_v59 }
 0x56e   : > { %2474 = vbcast.lane.b32.xlu0 %v2472_v25, 256  ;;  %3616 = vmatpush3.bf16.msra.mxu0 %v3714_v59 }
 0x56f   : > { %2502 = vbcast.lane.b32.xlu1 %v2500_v40, 256 }
 0x572   : > { %2481 = vbcast.lane.b32.xlu0 %v2479_v58, 256 }
 0x573   : > { %2509 = vbcast.lane.b32.xlu1 %v2507_v1, 256 }
 0x576   : > { %2488 = vbcast.lane.b32.xlu0 %v2486_v19, 256 }
 0x577   : > { %2516 = vbcast.lane.b32.xlu1 %v2514_v4, 256 }
 0x57a   : > { %2607 = vbcast.lane.b32.xlu0 %v2605_v34, 256 }
 0x57b   : > { %2523 = vbcast.lane.b32.xlu1 %v2521_v0, 256 }
 0x57e   : > { %2593 = vbcast.lane.b32.xlu0 %v2591_v2, 256 }
 0x57f   : > { %2530 = vbcast.lane.b32.xlu1 %v2528_v50, 256 }
 0x582   : > { %2600 = vbcast.lane.b32.xlu0 %v2598_v13, 256 }
 0x583   : > { %2537 = vbcast.lane.b32.xlu1 %v2535_v62, 256 }
 0x587   : > { %2544 = vbcast.lane.b32.xlu1 %v2542_v23, 256 }
 0x58b   : > { %2656 = vbcast.lane.b32.xlu1 %v2654_v22, 256 }
 0x5bc   : > { %v2559_v12 = vpop.permute.xlu1 %2558  ;;  %v2552_v14 = vpop.permute.xlu0 %2551 }
 0x5bd   : > { %v2675_v9 = vmul.f32 %v5183_v44, %v2559_v12  ;;  %v2674_v20 = vmul.f32 %v4395_v47, %v2552_v14 }
 0x5bf   : > { %v2792_v6 = vrot.slane %v2675_v9, 4  ;;  %v2786_v31 = vrot.slane %v2674_v20, 4 }
 0x5c0   : > { %v2440_v7 = vpop.permute.xlu1 %2439  ;;  %v2566_v45 = vpop.permute.xlu0 %2565 }
 0x5c1   : > { %v2793_v42 = vadd.f32 %v2792_v6, %v2675_v9  ;;  %v2787_v16 = vadd.f32 %v2786_v31, %v2674_v20  ;;  %v2658_v18 = vmul.f32 %v4383_v26, %v2440_v7  ;;  %v2676_v28 = vmul.f32 %v5184_v21, %v2566_v45 }
 0x5c3   : > { %v2794_v48 = vrot.slane %v2793_v42, 2  ;;  %v2788_v46 = vrot.slane %v2787_v16, 2  ;;  %v2690_v36 = vrot.slane %v2658_v18, 4  ;;  %v2798_v25 = vrot.slane %v2676_v28, 4 }
 0x5c4   : > { %v2573_v40 = vpop.permute.xlu0 %2572 }
 0x5c5   : > { %v2795_v58 = vadd.f32 %v2794_v48, %v2793_v42  ;;  %v2789_v1 = vadd.f32 %v2788_v46, %v2787_v16  ;;  %v2691_v44 = vadd.f32 %v2690_v36, %v2658_v18  ;;  %v2799_v10 = vadd.f32 %v2798_v25, %v2676_v28  ;;  %v2615_v47 = vpop.permute.xlu1 %2614 }
 0x5c6   : > { %v2677_v19 = vmul.f32 %v5192_v53, %v2573_v40  ;;  %v2683_v4 = vmul.f32 %v5186_v52, %v2615_v47 }
 0x5c7   : > { %v2800_v34 = vrot.slane %v2799_v10, 2  ;;  %v2796_v50 = vrot.slane %v2795_v58, 1  ;;  %v2790_v21 = vrot.slane %v2789_v1, 1  ;;  %v2692_v13 = vrot.slane %v2691_v44, 2 }
 0x5c8   : > { %v2804_v0 = vrot.slane %v2677_v19, 4  ;;  %v2840_v2 = vrot.slane %v2683_v4, 4  ;;  %v2580_v26 = vpop.permute.xlu0 %2579 }
 0x5c9   : > { %v2622_v62 = vpop.permute.xlu1 %2621  ;;  %v2678_v37 = vmul.f32 %v4428_v49, %v2580_v26  ;;  %v2801_v33 = vadd.f32 %v2800_v34, %v2799_v10  ;;  %v2797_v52 = vadd.f32 %v2796_v50, %v2795_v58  ;;  %v2791_v60 = vadd.f32 %v2790_v21, %v2789_v1 }
 0x5ca   : > { %v2805_v23 = vadd.f32 %v2804_v0, %v2677_v19  ;;  %v2841_v22 = vadd.f32 %v2840_v2, %v2683_v4  ;;  %v2684_v39 = vmul.f32 %v5188_v51, %v2622_v62  ;;  %v2693_v12 = vadd.f32 %v2692_v13, %v2691_v44 }
 0x5cb   : > { %v2810_v61 = vrot.slane %v2678_v37, 4  ;;  %v2802_v7 = vrot.slane %v2801_v33, 1  ;;  %v2899_v28 = vpack.c.bf16 %v2797_v52, %v2797_v52  ;;  %v2898_v48 = vpack.c.bf16 %v2791_v60, %v2791_v60 }
 0x5cc   : > { %v2806_v17 = vrot.slane %v2805_v23, 2  ;;  %v2846_v53 = vrot.slane %v2684_v39, 4  ;;  %v2587_v63 = vpop.permute.xlu0 %2586  ;;  %v2842_v14 = vrot.slane %v2841_v22, 2  ;;  %v2694_v46 = vrot.slane %v2693_v12, 1 }
 0x5cd   : > { %v2629_v59 = vpop.permute.xlu1 %2628  ;;  %v2811_v9 = vadd.f32 %v2810_v61, %v2678_v37  ;;  %v2679_v31 = vmul.f32 %v4442_v43, %v2587_v63  ;;  %v2803_v44 = vadd.f32 %v2802_v7, %v2801_v33  ;;  %v3093_v2 = vunpack.c.l.b16 %v2898_v48 }
 0x5ce   : > { %v2847_v20 = vadd.f32 %v2846_v53, %v2684_v39  ;;  %v2807_v6 = vadd.f32 %v2806_v17, %v2805_v23  ;;  %v2685_v16 = vmul.f32 %v4451_v38, %v2629_v59  ;;  %v2843_v36 = vadd.f32 %v2842_v14, %v2841_v22 }
 0x5cf   : > { %v2812_v45 = vrot.slane %v2811_v9, 2  ;;  %v2816_v51 = vrot.slane %v2679_v31, 4  ;;  %v3094_v38 = vunpack.c.l.b16 %v2899_v28  ;;  %v2695_v26 = vadd.f32 %v2694_v46, %v2693_v12 }
 0x5d0   : > { %v2447_v49 = vpop.permute.xlu0 %2446  ;;  %v2848_v42 = vrot.slane %v2847_v20, 2  ;;  %v2808_v25 = vrot.slane %v2807_v6, 1  ;;  %v2852_v58 = vrot.slane %v2685_v16, 4  ;;  %v2844_v13 = vrot.slane %v2843_v36, 1 }
 0x5d1   : > { %v2636_v18 = vpop.permute.xlu1 %2635  ;;  %v2817_v40 = vadd.f32 %v2816_v51, %v2679_v31  ;;  %v2659_v1 = vmul.f32 %v5187_v57, %v2447_v49  ;;  %v2813_v10 = vadd.f32 %v2812_v45, %v2811_v9  ;;  %v2900_v22 = vpack.c.bf16 %v2803_v44, %v2803_v44 }
 0x5d2   : > { %v2849_v47 = vadd.f32 %v2848_v42, %v2847_v20  ;;  %v2686_v34 = vmul.f32 %v4475_v24, %v2636_v18  ;;  %v2853_v50 = vadd.f32 %v2852_v58, %v2685_v16  ;;  %v2809_v21 = vadd.f32 %v2808_v25, %v2807_v6 }
 0x5d3   : > { %v2818_v19 = vrot.slane %v2817_v40, 2  ;;  %v2696_v4 = vrot.slane %v2659_v1, 4  ;;  %v2814_v37 = vrot.slane %v2813_v10, 1  ;;  %v3123_v24 = vsel %vm1519_vm8, %v3094_v38, %v3093_v2 }
 0x5d4   : > { %v2454_v43 = vpop.permute.xlu0 %2453  ;;  %v2858_v23 = vrot.slane %v2686_v34, 4  ;;  %v2850_v33 = vrot.slane %v2849_v47, 1  ;;  %v2854_v52 = vrot.slane %v2853_v50, 2  ;;  %v2882_v12 = vpack.c.bf16 %v2695_v26, %v2695_v26 }
 0x5d5   : > { %v2643_v0 = vpop.permute.xlu1 %2642  ;;  %v2697_v62 = vadd.f32 %v2696_v4, %v2659_v1  ;;  %v2660_v57 = vmul.f32 %v5189_v41, %v2454_v43  ;;  %v2819_v17 = vadd.f32 %v2818_v19, %v2817_v40  ;;  %v2901_v14 = vpack.c.bf16 %v2809_v21, %v2809_v21 }
 0x5d6   : > { %v2859_v53 = vadd.f32 %v2858_v23, %v2686_v34  ;;  %v2687_v59 = vmul.f32 %v4481_v8, %v2643_v0  ;;  %v2845_v9 = vadd.f32 %v2844_v13, %v2843_v36  ;;  %v3095_v49 = vunpack.c.l.b16 %v2900_v22 }
 0x5d7   : > { %v2698_v61 = vrot.slane %v2697_v62, 2  ;;  %v2702_v60 = vrot.slane %v2660_v57, 4  ;;  %v2815_v42 = vadd.f32 %v2814_v37, %v2813_v10  ;;  %v2851_v51 = vadd.f32 %v2850_v33, %v2849_v47 }
 0x5d8   : > { %v2461_v39 = vpop.permute.xlu0 %2460  ;;  %v2860_v6 = vrot.slane %v2859_v53, 2  ;;  %v2864_v7 = vrot.slane %v2687_v59, 4  ;;  %v2820_v16 = vrot.slane %v2819_v17, 1  ;;  %v2855_v28 = vadd.f32 %v2854_v52, %v2853_v50 }
 0x5d9   : > { %v2650_v63 = vpop.permute.xlu1 %2649  ;;  %v2699_v20 = vadd.f32 %v2698_v61, %v2697_v62  ;;  %v2703_v31 = vadd.f32 %v2702_v60, %v2660_v57  ;;  %v2661_v41 = vmul.f32 %v5194_v55, %v2461_v39  ;;  %v4935_v25 = vunpack.c.l.b16 %v2882_v12 }
 0x5da   : > { %v2688_v8 = vmul.f32 %v4473_v27, %v2650_v63  ;;  %v3096_v36 = vunpack.c.l.b16 %v2901_v14  ;;  %v2907_v40 = vpack.c.bf16 %v2845_v9, %v2845_v9  ;;  %v2861_v1 = vadd.f32 %v2860_v6, %v2859_v53 }
 0x5db   : > { %v2704_v48 = vrot.slane %v2703_v31, 2  ;;  %v2708_v46 = vrot.slane %v2661_v41, 4  ;;  %v2700_v58 = vrot.slane %v2699_v20, 1  ;;  %v2865_v44 = vadd.f32 %v2864_v7, %v2687_v59 }
 0x5dc   : > { %v2468_v45 = vpop.permute.xlu0 %2467  ;;  %v2870_v55 = vrot.slane %v2688_v8, 4  ;;  %v3124_v10 = vsel %vm1521_vm9, %v3095_v49, %v3123_v24  ;;  %v2902_v47 = vpack.c.bf16 %v2815_v42, %v2815_v42  ;;  %v2908_v4 = vpack.c.bf16 %v2851_v51, %v2851_v51 }
 0x5dd   : > { %v2496_v18 = vpop.permute.xlu1 %2495  ;;  %v2709_v43 = vadd.f32 %v2708_v46, %v2661_v41  ;;  %v2821_v34 = vadd.f32 %v2820_v16, %v2819_v17  ;;  %v2856_v38 = vrot.slane %v2855_v28, 1  ;;  %v2705_v2 = vadd.f32 %v2704_v48, %v2703_v31 }
 0x5de   : > { %v2871_v27 = vadd.f32 %v2870_v55, %v2688_v8  ;;  %v4939_v50 = vsel %vm1523_vm10, %v3096_v36, %v3124_v10  ;;  %v4941_v21 = vunpack.c.l.b16 %v2907_v40  ;;  %v2662_v13 = vmul.f32 %v5190_v3, %v2468_v45 }
 0x5df   : > { %v2710_v26 = vrot.slane %v2709_v43, 2  ;;  %v2666_v62 = vmul.f32 %v5185_v32, %v2496_v18  ;;  %v2701_v23 = vadd.f32 %v2700_v58, %v2699_v20  ;;  %v2862_v22 = vrot.slane %v2861_v1, 1 }
 0x5e0   : > { %v2475_v19 = vpop.permute.xlu0 %2474  ;;  %v2866_v37 = vrot.slane %v2865_v44, 2  ;;  %v4945_v33 = vunpack.c.l.b16 %v2902_v47  ;;  %v4947_v17 = vunpack.c.l.b16 %v2908_v4  ;;  %v2714_v61 = vrot.slane %v2662_v13, 4 }
 0x5e1   : > { %v2503_v0 = vpop.permute.xlu1 %2502  ;;  %v2711_v57 = vadd.f32 %v2710_v26, %v2709_v43  ;;  %v2738_v53 = vrot.slane %v2666_v62, 4  ;;  %v2903_v24 = vpack.c.bf16 %v2821_v34, %v2821_v34  ;;  %v2857_v52 = vadd.f32 %v2856_v38, %v2855_v28 }
 0x5e2   : > { %v2706_v60 = vrot.slane %v2705_v2, 1  ;;  %v2872_v59 = vrot.slane %v2871_v27, 2  ;;  %v2715_v12 = vadd.f32 %v2714_v61, %v2662_v13  ;;  %v2663_v32 = vmul.f32 %v5195_v30, %v2475_v19 }
 0x5e3   : > { %v2739_v3 = vadd.f32 %v2738_v53, %v2666_v62  ;;  %v2667_v14 = vmul.f32 %v5191_v56, %v2503_v0  ;;  %v2883_v9 = vpack.c.bf16 %v2701_v23, %v2701_v23  ;;  %v2863_v20 = vadd.f32 %v2862_v22, %v2861_v1 }
 0x5e4   : > { %v2482_v39 = vpop.permute.xlu0 %2481  ;;  %v2867_v6 = vadd.f32 %v2866_v37, %v2865_v44  ;;  %v2712_v31 = vrot.slane %v2711_v57, 1  ;;  %v2716_v7 = vrot.slane %v2715_v12, 2  ;;  %v2720_v45 = vrot.slane %v2663_v32, 4 }
 0x5e5   : > { %v2510_v63 = vpop.permute.xlu1 %2509  ;;  %v2740_v41 = vrot.slane %v2739_v3, 2  ;;  %v2744_v49 = vrot.slane %v2667_v14, 4  ;;  %v4951_v16 = vunpack.c.l.b16 %v2903_v24  ;;  %v2909_v18 = vpack.c.bf16 %v2857_v52, %v2857_v52 }
 0x5e6   : > { %v2707_v28 = vadd.f32 %v2706_v60, %v2705_v2  ;;  %v2873_v48 = vadd.f32 %v2872_v59, %v2871_v27  ;;  %v2717_v46 = vadd.f32 %v2716_v7, %v2715_v12  ;;  %v2721_v30 = vadd.f32 %v2720_v45, %v2663_v32 }
 0x5e7   : > { %v2741_v8 = vadd.f32 %v2740_v41, %v2739_v3  ;;  %v2745_v36 = vadd.f32 %v2744_v49, %v2667_v14  ;;  %v3078_v56 = vunpack.c.l.b16 %v2883_v9  ;;  %v2910_v40 = vpack.c.bf16 %v2863_v20, %v2863_v20 }
 0x5e8   : > { %v2489_v42 = vpop.permute.xlu0 %2488  ;;  %v2664_v58 = vmul.f32 %v5196_v54, %v2482_v39  ;;  %v2668_v1 = vmul.f32 %v5193_v11, %v2510_v63  ;;  %v2868_v44 = vrot.slane %v2867_v6, 1  ;;  %v2713_v43 = vadd.f32 %v2712_v31, %v2711_v57 }
 0x5e9   : > { %v2517_v51 = vpop.permute.xlu1 %2516  ;;  %v2722_v55 = vrot.slane %v2721_v30, 2  ;;  %v2746_v19 = vrot.slane %v2745_v36, 2  ;;  %v2884_v47 = vpack.c.bf16 %v2707_v28, %v2707_v28  ;;  %v2874_v4 = vrot.slane %v2873_v48, 1 }
 0x5ea   : > { %v2726_v34 = vrot.slane %v2664_v58, 4  ;;  %v2750_v0 = vrot.slane %v2668_v1, 4  ;;  %v2718_v38 = vrot.slane %v2717_v46, 1  ;;  %v2742_v2 = vrot.slane %v2741_v8, 1 }
 0x5eb   : > { %v2723_v26 = vadd.f32 %v2722_v55, %v2721_v30  ;;  %v2747_v27 = vadd.f32 %v2746_v19, %v2745_v36  ;;  %v2665_v54 = vmul.f32 %v4416_v15, %v2489_v42  ;;  %v2669_v11 = vmul.f32 %v5197_v35, %v2517_v51 }
 0x5ec   : > { %v2608_v13 = vpop.permute.xlu0 %2607  ;;  %v2727_v62 = vadd.f32 %v2726_v34, %v2664_v58  ;;  %v2751_v23 = vadd.f32 %v2750_v0, %v2668_v1  ;;  %v4957_v22 = vunpack.c.l.b16 %v2909_v18  ;;  %v3109_v37 = vsel %vm1519_vm8, %v3078_v56, %v4935_v25 }
 0x5ed   : > { %v2524_v10 = vpop.permute.xlu1 %2523  ;;  %v4961_v57 = vadd.f32 %v2868_v44, %v2867_v6  ;;  %v2885_v39 = vpack.c.bf16 %v2713_v43, %v2713_v43  ;;  %v2724_v53 = vrot.slane %v2723_v26, 1  ;;  %v2732_v24 = vrot.slane %v2665_v54, 4 }
 0x5ee   : > { %v2752_v63 = vrot.slane %v2751_v23, 2  ;;  %v2756_v52 = vrot.slane %v2669_v11, 4  ;;  %v4963_v60 = vunpack.c.l.b16 %v2910_v40  ;;  %v3079_v59 = vunpack.c.l.b16 %v2884_v47  ;;  %v5214_v40 = vld [vmem:[#allocation27_spill] sm:$0xff] }
 0x5ef   : > { %v4965_v12 = vadd.f32 %v2874_v4, %v2873_v48  ;;  %v2719_v15 = vadd.f32 %v2718_v38, %v2717_v46  ;;  %v2743_v35 = vadd.f32 %v2742_v2, %v2741_v8  ;;  %v2748_v3 = vrot.slane %v2747_v27, 1  ;;  %v5215_v4 = vld [vmem:[#allocation35_spill] sm:$0xff] }
 0x5f0   : > { %v2728_v32 = vrot.slane %v2727_v62, 2  ;;  %v2757_v14 = vadd.f32 %v2756_v52, %v2669_v11  ;;  %v2911_v25 = vpack.c.bf16 %v4961_v57, %v4961_v57  ;;  %v3080_v9 = vunpack.c.l.b16 %v2885_v39  ;;  %v2594_v31 = vpop.permute.xlu0 %2593 }
 0x5f1   : > { %v2531_v61 = vpop.permute.xlu1 %2530  ;;  %v2682_v20 = vmul.f32 %v4434_v29, %v2608_v13  ;;  %v2670_v6 = vmul.f32 %v4461_v5, %v2524_v10  ;;  %v2725_v41 = vadd.f32 %v2724_v53, %v2723_v26  ;;  %v2753_v45 = vadd.f32 %v2752_v63, %v2751_v23  ;;  %v5216_v63 = vld [vmem:[#allocation29_spill] sm:$0xff] }
 0x5f2   : > { %v2733_v49 = vadd.f32 %v2732_v24, %v2665_v54  ;;  %v2758_v42 = vrot.slane %v2757_v14, 2  ;;  %v3110_v51 = vsel %vm1521_vm9, %v3079_v59, %v3109_v37  ;;  %v2912_v18 = vpack.c.bf16 %v4965_v12, %v4965_v12 }
 0x5f3   : > { %v2834_v28 = vrot.slane %v2682_v20, 4  ;;  %v2762_v48 = vrot.slane %v2670_v6, 4  ;;  %v2886_v46 = vpack.c.bf16 %v2719_v15, %v2719_v15  ;;  %v2890_v8 = vpack.c.bf16 %v2743_v35, %v2743_v35 }
 0x5f4   : > { %v2749_v30 = vadd.f32 %v2748_v3, %v2747_v27  ;;  %v2729_v36 = vadd.f32 %v2728_v32, %v2727_v62  ;;  %v4975_v29 = vsel %vm1523_vm10, %v3080_v9, %v3110_v51  ;;  %v2680_v58 = vmul.f32 %v5214_v40, %v2594_v31  ;;  %v2601_v0 = vpop.permute.xlu0 %2600 }
 0x5f5   : > { %v2538_v7 = vpop.permute.xlu1 %2537  ;;  %v2835_v5 = vadd.f32 %v2834_v28, %v2682_v20  ;;  %v2763_v56 = vadd.f32 %v2762_v48, %v2670_v6  ;;  %v2887_v1 = vpack.c.bf16 %v2725_v41, %v2725_v41  ;;  %v2754_v44 = vrot.slane %v2753_v45, 1 }
 0x5f6   : > { %v2734_v43 = vrot.slane %v2733_v49, 2  ;;  %v2759_v55 = vadd.f32 %v2758_v42, %v2757_v14  ;;  %v2822_v47 = vrot.slane %v2680_v58, 4  ;;  %v2671_v34 = vmul.f32 %v5215_v4, %v2531_v61  ;;  %v5217_v14 = vld [vmem:[#allocation33_spill] sm:$0xff] }
 0x5f7   : > { %v2836_v19 = vrot.slane %v2835_v5, 2  ;;  %v2764_v10 = vrot.slane %v2763_v56, 2  ;;  %v4979_v2 = vunpack.c.l.b16 %v2886_v46  ;;  %v4981_v26 = vunpack.c.l.b16 %v2890_v8 }
 0x5f8   : > { %v2891_v27 = vpack.c.bf16 %v2749_v30, %v2749_v30  ;;  %v2730_v13 = vrot.slane %v2729_v36, 1  ;;  %v2823_v54 = vadd.f32 %v2822_v47, %v2680_v58  ;;  %v2768_v11 = vrot.slane %v2671_v34, 4  ;;  %v5219_v58 = vld [vmem:[#allocation36_spill] sm:$0xff] }
 0x5f9   : > { %v2545_v38 = vpop.permute.xlu1 %2544  ;;  %v2837_v62 = vadd.f32 %v2836_v19, %v2835_v5  ;;  %v2765_v23 = vadd.f32 %v2764_v10, %v2763_v56  ;;  %v4983_v37 = vunpack.c.l.b16 %v2887_v1  ;;  %v2755_v39 = vadd.f32 %v2754_v44, %v2753_v45 }
 0x5fa   : > { %v2735_v53 = vadd.f32 %v2734_v43, %v2733_v49  ;;  %v2681_v24 = vmul.f32 %v5216_v63, %v2601_v0  ;;  %v2760_v52 = vrot.slane %v2759_v55, 1  ;;  %v2824_v59 = vrot.slane %v2823_v54, 2  ;;  %v5218_v49 = vld [vmem:[#allocation34_spill] sm:$0xff] }
 0x5fb   : > { %v2838_v61 = vrot.slane %v2837_v62, 1  ;;  %v2769_v15 = vadd.f32 %v2768_v11, %v2671_v34  ;;  %v3086_v35 = vunpack.c.l.b16 %v2891_v27  ;;  %v2731_v3 = vadd.f32 %v2730_v13, %v2729_v36 }
 0x5fc   : > { %v2828_v32 = vrot.slane %v2681_v24, 4  ;;  %v2672_v9 = vmul.f32 %v5217_v14, %v2538_v7  ;;  %v2766_v6 = vrot.slane %v2765_v23, 1  ;;  %v2825_v31 = vadd.f32 %v2824_v59, %v2823_v54 }
 0x5fd   : > { %v2839_v20 = vadd.f32 %v2838_v61, %v2837_v62  ;;  %v2770_v41 = vrot.slane %v2769_v15, 2  ;;  %v2657_v42 = vpop.permute.xlu1 %2656  ;;  %v2892_v51 = vpack.c.bf16 %v2755_v39, %v2755_v39  ;;  %v2673_v48 = vmul.f32 %v5218_v49, %v2545_v38 }
 0x5fe   : > { %v2829_v28 = vadd.f32 %v2828_v32, %v2681_v24  ;;  %v2774_v45 = vrot.slane %v2672_v9, 4  ;;  %v2736_v46 = vrot.slane %v2735_v53, 1  ;;  %v2761_v8 = vadd.f32 %v2760_v52, %v2759_v55 }
 0x5ff   : > { %v2906_v30 = vpack.c.bf16 %v2839_v20, %v2839_v20  ;;  %v2771_v5 = vadd.f32 %v2770_v41, %v2769_v15  ;;  %v2780_v36 = vrot.slane %v2673_v48, 4  ;;  %v2689_v1 = vmul.f32 %v5219_v58, %v2657_v42 }
 0x600   : > { %v2830_v56 = vrot.slane %v2829_v28, 2  ;;  %v2775_v40 = vadd.f32 %v2774_v45, %v2672_v9  ;;  %v2767_v44 = vadd.f32 %v2766_v6, %v2765_v23  ;;  %v2826_v43 = vrot.slane %v2825_v31, 1 }
 0x601   : > { %v3101_v7 = vunpack.c.l.b16 %v2906_v30  ;;  %v2772_v19 = vrot.slane %v2771_v5, 1  ;;  %v2781_v4 = vadd.f32 %v2780_v36, %v2673_v48  ;;  %v2876_v34 = vrot.slane %v2689_v1, 4 }
 0x602   : > { %v2831_v10 = vadd.f32 %v2830_v56, %v2829_v28  ;;  %v2776_v47 = vrot.slane %v2775_v40, 2  ;;  %v2737_v0 = vadd.f32 %v2736_v46, %v2735_v53  ;;  %v2893_v27 = vpack.c.bf16 %v2761_v8, %v2761_v8 }
 0x603   : > { %v3130_v55 = vsel %vm1519_vm8, %v4941_v21, %v3101_v7  ;;  %v2773_v38 = vadd.f32 %v2772_v19, %v2771_v5  ;;  %v2888_v13 = vpack.c.bf16 %v2731_v3, %v2731_v3  ;;  %v2782_v11 = vrot.slane %v2781_v4, 2 }
 0x604   : > { %v2832_v62 = vrot.slane %v2831_v10, 1  ;;  %v2777_v54 = vadd.f32 %v2776_v47, %v2775_v40  ;;  %v3087_v39 = vunpack.c.l.b16 %v2892_v51  ;;  %v2894_v63 = vpack.c.bf16 %v2767_v44, %v2767_v44 }
 0x605   : > { %v2827_v24 = vadd.f32 %v2826_v43, %v2825_v31  ;;  %v2877_v23 = vadd.f32 %v2876_v34, %v2689_v1  ;;  %v3131_v52 = vsel %vm1521_vm9, %v4947_v17, %v3130_v55  ;;  %v2895_v61 = vpack.c.bf16 %v2773_v38, %v2773_v38 }
 0x606   : > { %v2778_v59 = vrot.slane %v2777_v54, 1  ;;  %v2783_v15 = vadd.f32 %v2782_v11, %v2781_v4  ;;  %v2889_v53 = vpack.c.bf16 %v2737_v0, %v2737_v0  ;;  %v3088_v32 = vunpack.c.l.b16 %v2893_v27 }
 0x607   : > { %v2833_v14 = vadd.f32 %v2832_v62, %v2831_v10  ;;  %v2878_v9 = vrot.slane %v2877_v23, 2  ;;  %v3116_v21 = vsel %vm1519_vm8, %v3086_v35, %v4981_v26  ;;  %v3083_v3 = vunpack.c.l.b16 %v2888_v13 }
 0x608   : > { %v2779_v20 = vadd.f32 %v2778_v59, %v2777_v54  ;;  %v2784_v6 = vrot.slane %v2783_v15, 1  ;;  %v3117_v41 = vsel %vm1521_vm9, %v3087_v39, %v3116_v21  ;;  %v3132_v31 = vsel %vm1523_vm10, %v4957_v22, %v3131_v52 }
 0x609   : > { %v3089_v42 = vunpack.c.l.b16 %v2894_v63  ;;  %v2879_v17 = vadd.f32 %v2878_v9, %v2877_v23  ;;  %v2904_v51 = vpack.c.bf16 %v2827_v24, %v2827_v24  ;;  %v3090_v28 = vunpack.c.l.b16 %v2895_v61 }
 0x60a   : > { %v2896_v45 = vpack.c.bf16 %v2779_v20, %v2779_v20  ;;  %v2785_v49 = vadd.f32 %v2784_v6, %v2783_v15  ;;  %v3084_v48 = vunpack.c.l.b16 %v2889_v53  ;;  %v3118_v46 = vsel %vm1523_vm10, %v3088_v32, %v3117_v41 }
 0x60b   : > { %v2905_v8 = vpack.c.bf16 %v2833_v14, %v2833_v14  ;;  %v2880_v30 = vrot.slane %v2879_v17, 1  ;;  %v3112_v5 = vsel %vm1525_vm11, %v4979_v2, %v4975_v29  ;;  %v3133_v22 = vsel %vm1525_vm11, %v4963_v60, %v3132_v31 }
 0x60c   : > { %v3091_v26 = vunpack.c.l.b16 %v2896_v45  ;;  %v2897_v35 = vpack.c.bf16 %v2785_v49, %v2785_v49  ;;  %v3106_v56 = vunpack.c.l.b16 %v2911_v25  ;;  %v3113_v36 = vsel %vm1527_vm12, %v4983_v37, %v3112_v5 }
 0x60d   : > { %v2881_v40 = vadd.f32 %v2880_v30, %v2879_v17  ;;  %v3119_v58 = vsel %vm1525_vm11, %v3089_v42, %v3118_v46  ;;  %v3099_v1 = vunpack.c.l.b16 %v2904_v51  ;;  %v3114_v44 = vsel %vm1529_vm13, %v3083_v3, %v3113_v36 }
 0x60e   : > { %v3092_v7 = vunpack.c.l.b16 %v2897_v35  ;;  %v3120_v43 = vsel %vm1527_vm12, %v3090_v28, %v3119_v58  ;;  %v3100_v29 = vunpack.c.l.b16 %v2905_v8  ;;  %v3134_v19 = vsel %vm1527_vm12, %v3106_v56, %v3133_v22 }
 0x60f   : > { %v2913_v2 = vpack.c.bf16 %v2881_v40, %v2881_v40  ;;  %v3121_v60 = vsel %vm1529_vm13, %v3091_v26, %v3120_v43  ;;  %v3126_v57 = vsel %vm1525_vm11, %v4945_v33, %v4939_v50  ;;  %v3107_v25 = vunpack.c.l.b16 %v2912_v18 }
 0x610   : > { %v3115_v37 = vsel %vm1531_vm14, %v3084_v48, %v3114_v44  ;;  %v3122_v10 = vsel %vm1531_vm14, %v3092_v7, %v3121_v60  ;;  %v3127_v47 = vsel %vm1527_vm12, %v4951_v16, %v3126_v57 }
 0x611   : > { %v3108_v4 = vunpack.c.l.b16 %v2913_v2  ;;  %v3137_v34 = vpack.c.b16 %v3122_v10, %v3115_v37  ;;  %v3128_v0 = vsel %vm1529_vm13, %v3099_v1, %v3127_v47  ;;  %v3135_v27 = vsel %vm1529_vm13, %v3107_v25, %v3134_v19 }
 0x612   : > { %v3129_v50 = vsel %vm1531_vm14, %v3100_v29, %v3128_v0 }
 0x613   : > { %3617 = vmatprep.mubr.bf16.mxu0 %v3137_v34  ;;  %v3136_v33 = vsel %vm1531_vm14, %v3108_v4, %v3135_v27 }
 0x614   : > { %v3138_v12 = vpack.c.b16 %v3136_v33, %v3129_v50 }
 0x616   : > { %3618 = vmatmul.mubr.bf16.vlgmr.msra.gmra.mrb[16].mxu0 %v3138_v12 }
 0x6e9   : > { %v3619_v18 = vpop.f32.mrb[16].mxu0 }
 0x6ea   : > { %3811 = vtanh.f32 %v3619_v18  ;;  %v3223_v55 = vpop.f32.mrb[17].mxu0 }
 0x6eb   : > { %3813 = vtanh.f32 %v3223_v55  ;;  %v3620_v16 = vpop.f32.mrb[18].mxu0 }
 0x6ec   : > { %3815 = vtanh.f32 %v3620_v16  ;;  %v3226_v38 = vpop.f32.mrb[19].mxu0 }
 0x6ed   : > { %3817 = vtanh.f32 %v3226_v38 }
 0x6f4   : > { %v3812_v13 = vpop.eup %3811 }
 0x6f5   : > { %v3814_v62 = vpop.eup %3813  ;;  %3244 = vst [vmem:[%s331_s20 + $0x10] sm:$0xff] %v3812_v13 }
 0x6f6   : > { %v3816_v54 = vpop.eup %3815  ;;  %3242 = vst [vmem:[%s331_s20] sm:$0xff] %v3814_v62 }
 0x6f7   : > { %v3818_v11 = vpop.eup %3817  ;;  %3245 = vst [vmem:[%s331_s20 + $0x18] sm:$0xff] %v3816_v54 }
 0x6f8   : > { %3243 = vst [vmem:[%s331_s20 + $0x8] sm:$0xff] %v3818_v11 }
 0x6f9   : > { %3832 = shalt.err (!%p3829_p4)
}
 0x6fa   : > { %s3833_s13 = scalar_lea.hbm %s5033_s23, 512  ;;  %s3837_s17 = scalar_lea.hbm %s5086_s8, 1024 }
 0x6fb   : > { %p3834_p7 = scmp.ne.s32.totalorder %s5033_s23, %s3833_s13  ;;  %p3838_p10 = scmp.lt.u32.totalorder %s5033_s23, %s5086_s8 }
 0x6fc   : > { %p3839_p11 = scmp.lt.u32.totalorder %s3837_s17, %s3833_s13  ;;  %p3841_p13 = scmp.lt.u32.totalorder %s3833_s13, %s5033_s23 }
 0x6fd   : > { %p3835_p8 = pnand %p3834_p7, %p3972_p5 }
 0x6fe   : > { %p3840_p12 = por %p3839_p11, %p3838_p10 }
 0x6ff   : > { %p3836_p9 = pneg %p3835_p8 }
 0x700   : > { %p3842_p0 = por %p3841_p13, %p3840_p12 }
 0x702   : > { %p3843_p1 = pnand %p3842_p0, %p3836_p9 }
 0x704   : > { %3846 = shalt.err (!%p3843_p1)
}
 0x705   : > { %s3887_s22 = smov 128   ;;  %s3888_s24 = smov 8  }
 0x706   : > { %3637 = dma.vmem_to_hbm [thread:$0]  (%p3972_p5), %s5035_s18, 512, %s5033_s23, %s5037_s9, %s3887_s22, %s3887_s22, %s3888_s24  }
 0x707 PF: > { %p3643_p2 = scmp.ge.s32.totalorder %s3881_s30, 2  ;;  %s3275_s25 = sand.u32 1, %s3869_s27  }
 0x708   : > { %s3276_s26 = scalar_lea.sflag [#allocation3], %s3275_s25 }
 0x709   : > { %p3640_p3 = pnand %p3643_p2, %p3976_p6 }
 0x70b   : > { %3864 = dma.done.wait (!%p3640_p3), %s3276_s26, 512  }
 0x70c   : > { %3866 = vsyncadd (!%p3640_p3), %s3276_s26, 4294966784  ;;  %p18_p4 = scmp.ge.s32.totalorder %s3959_s11, 4   ;;  %s5220_s27 = smov %s3873_s28 }
 0x70d   : > { %s5221_s28 = smov %s3877_s29  ;;  %s5222_s29 = smov %s3970_s14 }
 0x70e   : > { %s5223_s30 = smov %s3959_s11  ;;  %20 = sbr.rel (!%p18_p4) target bundleno = 3 (0x3), region = 93 }
 0x715   :  { %3281 = vsyncpa [#allocation3], 1 }
 0x716   :  { %3283 = vsyncpa [#allocation3 + $0x1], 1 }

</bundles_post_ra>
